<compile_context>
chip_gen: v7x
topology: tpu7x:2x2x1
jax: 0.10.0
libtpu: 0.0.40
codegen_flags: <defaults>
</compile_context>

<pallas_src>
import jax
import jax.numpy as jnp
from jax.experimental import pallas as pl
from jax.experimental.pallas import tpu as pltpu

D_IN, D_H, D_Z = 784, 400, 20
LANE = 128


def _round_up(n, m):
    return ((n + m - 1) // m) * m


DP_IN = _round_up(D_IN, LANE)   # 896
DP_H = _round_up(D_H, LANE)     # 512
DP_Z = _round_up(D_Z, LANE)     # 128


def _vae_kernel(x_ref, eps_ref,
                w1_ref, b1_ref,
                w2_ref, b2_ref,
                w3_ref, b3_ref,
                w4_ref, b4_ref,
                recon_ref, ml_ref):
    bf16 = jnp.bfloat16

    # encode: h1 = relu(x @ W1 + b1)   (x arrives as bf16; f32 accumulation)
    h1 = jnp.dot(x_ref[...], w1_ref[...], preferred_element_type=jnp.float32)
    h1 = jnp.maximum(h1 + b1_ref[...], 0.0)

    # fused head: [mu | logvar] = h1 @ [W21|W22] + [b21|b22]  -> (TB, 2*DP_Z)
    ml = jnp.dot(h1.astype(bf16), w2_ref[...], preferred_element_type=jnp.float32)
    ml = ml + b2_ref[...]
    mu = ml[:, :DP_Z]
    logvar = ml[:, DP_Z:]

    # reparametrize: z = eps * exp(0.5 * logvar) + mu   (f32, EUP exp)
    std = jnp.exp(0.5 * logvar)
    z = eps_ref[...] * std + mu

    # decode: h3 = relu(z @ W3 + b3) ; recon = tanh(h3 @ W4 + b4)
    h3 = jnp.dot(z.astype(bf16), w3_ref[...], preferred_element_type=jnp.float32)
    h3 = jnp.maximum(h3 + b3_ref[...], 0.0)
    recon = jnp.tanh(
        jnp.dot(h3.astype(bf16), w4_ref[...], preferred_element_type=jnp.float32)
        + b4_ref[...]
    )

    recon_ref[...] = recon.astype(recon_ref.dtype)   # bf16 writeback
    ml_ref[...] = ml                                 # fused mu|logvar, f32


def _pad_to(a, shape, dtype):
    """Zero-pad and cast in a single pass (pad + dtype cast fuse in XLA)."""
    out = jnp.zeros(shape, dtype)
    return out.at[tuple(slice(0, s) for s in a.shape)].set(a.astype(dtype))


def pack_params(params):
    """Pad weights to lane-dense shapes, quantize weights to bf16, fuse the
    mu/logvar head.  Do this once per set of weights, not per call."""
    (w1, b1, w21, b21, w22, b22, w3, b3, w4, b4) = params

    w1p = _pad_to(w1, (DP_IN, DP_H), jnp.bfloat16)
    b1p = _pad_to(b1, (1, DP_H), jnp.float32)

    w2p = jnp.zeros((DP_H, 2 * DP_Z), jnp.bfloat16)
    w2p = w2p.at[:D_H, :D_Z].set(w21.astype(jnp.bfloat16))
    w2p = w2p.at[:D_H, DP_Z:DP_Z + D_Z].set(w22.astype(jnp.bfloat16))
    b2p = jnp.zeros((1, 2 * DP_Z), jnp.float32)
    b2p = b2p.at[:, :D_Z].set(b21.astype(jnp.float32))
    b2p = b2p.at[:, DP_Z:DP_Z + D_Z].set(b22.astype(jnp.float32))

    w3p = _pad_to(w3, (DP_Z, DP_H), jnp.bfloat16)
    b3p = _pad_to(b3, (1, DP_H), jnp.float32)
    w4p = _pad_to(w4, (DP_H, DP_IN), jnp.bfloat16)
    b4p = _pad_to(b4, (1, DP_IN), jnp.float32)

    return (w1p, b1p, w2p, b2p, w3p, b3p, w4p, b4p)


def _choose_tb(batch, block_b):
    """Batch-tile size: >=2 tiles whenever possible (so 'parallel' semantics
    shard across v7x's 2 TCs) and minimal batch-padding waste (<= 7 rows/tile),
    capped at block_b (512 default fits v7x VMEM; raise to 1024 on v5e/v6e)."""
    b8 = _round_up(max(batch, 1), 8)
    if b8 <= 16:
        return b8
    n_tiles = max(2, -(-b8 // block_b))
    return _round_up(-(-b8 // n_tiles), 8)


def vae_forward(x, eps, packed_params, *, block_b=512, unpad=True):
    """x: (B, 784) f32/bf16, eps: (B, 20) f32.  Returns (recon, mu, logvar).

    recon is returned in bfloat16 (tanh range, halved HBM writeback); mu and
    logvar stay float32 for the KL term.  With unpad=False the padded
    (B_pad, 896) recon and (B_pad, 256) fused mu|logvar blocks are returned
    directly so a consumer can avoid the extra slice pass."""
    B = x.shape[0]
    TB = _choose_tb(B, block_b)
    grid_b = pl.cdiv(_round_up(B, 8), TB)
    B_pad = grid_b * TB

    # Pad + cast in one pass; x goes in as bf16 (halves the largest input DMA).
    xp = _pad_to(x, (B_pad, DP_IN), jnp.bfloat16)
    epsp = _pad_to(eps, (B_pad, DP_Z), jnp.float32)

    def row_spec(width):
        # batch-tiled activation/output blocks
        return pl.BlockSpec((TB, width), lambda i: (i, 0))

    def const_spec(shape):
        # weights/biases: same block every grid step -> DMA'd once, resident
        return pl.BlockSpec(shape, lambda i: (0, 0))

    (w1p, b1p, w2p, b2p, w3p, b3p, w4p, b4p) = packed_params
    weight_args = (w1p, b1p, w2p, b2p, w3p, b3p, w4p, b4p)

    in_specs = [row_spec(DP_IN), row_spec(DP_Z)] + \
               [const_spec(a.shape) for a in weight_args]
    out_specs = (row_spec(DP_IN), row_spec(2 * DP_Z))
    out_shape = (
        jax.ShapeDtypeStruct((B_pad, DP_IN), jnp.bfloat16),    # recon (padded)
        jax.ShapeDtypeStruct((B_pad, 2 * DP_Z), jnp.float32),  # mu|logvar fused
    )

    recon_p, ml_p = pl.pallas_call(
        _vae_kernel,
        out_shape=out_shape,
        grid_spec=pltpu.PrefetchScalarGridSpec(
            num_scalar_prefetch=0,
            grid=(grid_b,),
            in_specs=in_specs,
            out_specs=out_specs,
        ),
        compiler_params=pltpu.CompilerParams(
            dimension_semantics=("parallel",),   # batch tiles independent (v7x 2nd TC)
            vmem_limit_bytes=32 << 20,
        ),
    )(xp, epsp, *weight_args)

    if not unpad:
        return recon_p, ml_p
    recon = recon_p[:B, :D_IN]
    mu = ml_p[:B, :D_Z]
    logvar = ml_p[:B, DP_Z:DP_Z + D_Z]
    return recon, mu, logvar


def init_params(key):
    """Deterministic init mimicking nn.Linear default U(-1/sqrt(in), 1/sqrt(in)).

    Weights stored as (in_features, out_features) (i.e. W.T vs PyTorch), f32."""
    def linear(key, d_in, d_out):
        kw, kb = jax.random.split(key)
        bound = 1.0 / jnp.sqrt(d_in)
        w = jax.random.uniform(kw, (d_in, d_out), jnp.float32, -bound, bound)
        b = jax.random.uniform(kb, (1, d_out), jnp.float32, -bound, bound)
        return w, b

    k1, k21, k22, k3, k4 = jax.random.split(key, 5)
    w1, b1 = linear(k1, D_IN, D_H)
    w21, b21 = linear(k21, D_H, D_Z)
    w22, b22 = linear(k22, D_H, D_Z)
    w3, b3 = linear(k3, D_Z, D_H)
    w4, b4 = linear(k4, D_H, D_IN)
    return (w1, b1, w21, b21, w22, b22, w3, b3, w4, b4)


def vae_forward_ref(x, eps, params):
    """Pure-JAX reference emulating the kernel numerics: bf16 weights and MXU
    inputs, f32 accumulation, bf16 recon output."""
    (w1, b1, w21, b21, w22, b22, w3, b3, w4, b4) = params

    def mm(a, w):
        return jnp.dot(a.astype(jnp.bfloat16), w.astype(jnp.bfloat16),
                       preferred_element_type=jnp.float32)

    h1 = jnp.maximum(mm(x, w1) + b1, 0.0)
    mu = mm(h1, w21) + b21
    logvar = mm(h1, w22) + b22
    z = eps * jnp.exp(0.5 * logvar) + mu
    h3 = jnp.maximum(mm(z, w3) + b3, 0.0)
    recon = jnp.tanh(mm(h3, w4) + b4).astype(jnp.bfloat16)
    return recon, mu, logvar


if __name__ == "__main__":
    key = jax.random.PRNGKey(0)
    k_params, k_x, k_eps = jax.random.split(key, 3)

    B = 8
    params = init_params(k_params)
    packed = pack_params(params)                              # one-time weight prep
    x = jax.random.uniform(k_x, (B, D_IN), jnp.float32)       # MNIST-like pixels in [0,1)
    eps = jax.random.normal(k_eps, (B, D_Z), jnp.float32)     # reparametrization noise

    recon, mu, logvar = vae_forward(x, eps, packed)
    jax.block_until_ready((recon, mu, logvar))

    recon_r, mu_r, logvar_r = vae_forward_ref(x, eps, params)
    assert recon.shape == (B, D_IN) and mu.shape == (B, D_Z) and logvar.shape == (B, D_Z)
    assert recon.dtype == jnp.bfloat16
    # recon tolerance covers one bf16 ulp on [-1,1]; mu/logvar stay f32.
    assert jnp.allclose(recon.astype(jnp.float32), recon_r.astype(jnp.float32),
                        atol=1e-2, rtol=1e-2)
    assert jnp.allclose(mu, mu_r, atol=2e-3, rtol=2e-3)
    assert jnp.allclose(logvar, logvar_r, atol=2e-3, rtol=2e-3)

    print("KERNEL_OK")
</pallas_src>

<mosaic_0001>
module attributes {stable_mosaic.version = 11 : i64} {
  func.func @_vae_kernel(%arg0: i32, %arg1: memref<8x896xbf16, #tpu.memory_space<vmem>>, %arg2: memref<8x128xf32, #tpu.memory_space<vmem>>, %arg3: memref<896x512xbf16, #tpu.memory_space<vmem>>, %arg4: memref<1x512xf32, #tpu.memory_space<vmem>>, %arg5: memref<512x256xbf16, #tpu.memory_space<vmem>>, %arg6: memref<1x256xf32, #tpu.memory_space<vmem>>, %arg7: memref<128x512xbf16, #tpu.memory_space<vmem>>, %arg8: memref<1x512xf32, #tpu.memory_space<vmem>>, %arg9: memref<512x896xbf16, #tpu.memory_space<vmem>>, %arg10: memref<1x896xf32, #tpu.memory_space<vmem>>, %arg11: memref<8x896xbf16, #tpu.memory_space<vmem>>, %arg12: memref<8x256xf32, #tpu.memory_space<vmem>>) attributes {dimension_semantics = [#tpu.dimension_semantics<parallel>], iteration_bounds = array<i64: 1>, scalar_prefetch = 0 : i64, scratch_operands = 0 : i64, tpu.core_type = #tpu.core_type<tc>, window_params = [{transform_indices = @transform_0, window_bounds = array<i64: 8, 896>}, {transform_indices = @transform_1, window_bounds = array<i64: 8, 128>}, {pipeline_mode = #tpu.pipeline_mode<synchronous>, transform_indices = @transform_2, window_bounds = array<i64: 896, 512>}, {pipeline_mode = #tpu.pipeline_mode<synchronous>, transform_indices = @transform_3, window_bounds = array<i64: 1, 512>}, {pipeline_mode = #tpu.pipeline_mode<synchronous>, transform_indices = @transform_4, window_bounds = array<i64: 512, 256>}, {pipeline_mode = #tpu.pipeline_mode<synchronous>, transform_indices = @transform_5, window_bounds = array<i64: 1, 256>}, {pipeline_mode = #tpu.pipeline_mode<synchronous>, transform_indices = @transform_6, window_bounds = array<i64: 128, 512>}, {pipeline_mode = #tpu.pipeline_mode<synchronous>, transform_indices = @transform_7, window_bounds = array<i64: 1, 512>}, {pipeline_mode = #tpu.pipeline_mode<synchronous>, transform_indices = @transform_8, window_bounds = array<i64: 512, 896>}, {pipeline_mode = #tpu.pipeline_mode<synchronous>, transform_indices = @transform_9, window_bounds = array<i64: 1, 896>}, {transform_indices = @transform_10, window_bounds = array<i64: 8, 896>}, {transform_indices = @transform_11, window_bounds = array<i64: 8, 256>}]} {
    %c0 = arith.constant 0 : index
    %c0_0 = arith.constant 0 : index
    %0 = vector.load %arg1[%c0, %c0_0] : memref<8x896xbf16, #tpu.memory_space<vmem>>, vector<8x896xbf16>
    %c0_1 = arith.constant 0 : index
    %c0_2 = arith.constant 0 : index
    %1 = vector.load %arg3[%c0_1, %c0_2] : memref<896x512xbf16, #tpu.memory_space<vmem>>, vector<896x512xbf16>
    %cst = arith.constant dense<0.000000e+00> : vector<8x512xf32>
    %2 = tpu.matmul %0, %1, %cst {dimension_numbers = #tpu.dot_dimension_numbers<[1], [0], [0], [1], [0, 0, 1, 1], [], []>} : vector<8x896xbf16>, vector<896x512xbf16>, vector<8x512xf32> -> vector<8x512xf32>
    %c0_3 = arith.constant 0 : index
    %c0_4 = arith.constant 0 : index
    %3 = vector.load %arg4[%c0_3, %c0_4] : memref<1x512xf32, #tpu.memory_space<vmem>>, vector<1x512xf32>
    %4 = vector.broadcast %3 : vector<1x512xf32> to vector<8x512xf32>
    %5 = arith.addf %2, %4 : vector<8x512xf32>
    %cst_5 = arith.constant 0.000000e+00 : f32
    %6 = vector.broadcast %cst_5 : f32 to vector<8x512xf32>
    %7 = arith.maximumf %5, %6 : vector<8x512xf32>
    %8 = arith.truncf %7 : vector<8x512xf32> to vector<8x512xbf16>
    %c0_6 = arith.constant 0 : index
    %c0_7 = arith.constant 0 : index
    %9 = vector.load %arg5[%c0_6, %c0_7] : memref<512x256xbf16, #tpu.memory_space<vmem>>, vector<512x256xbf16>
    %cst_8 = arith.constant dense<0.000000e+00> : vector<8x256xf32>
    %10 = tpu.matmul %8, %9, %cst_8 {dimension_numbers = #tpu.dot_dimension_numbers<[1], [0], [0], [1], [0, 0, 1, 1], [], []>} : vector<8x512xbf16>, vector<512x256xbf16>, vector<8x256xf32> -> vector<8x256xf32>
    %c0_9 = arith.constant 0 : index
    %c0_10 = arith.constant 0 : index
    %11 = vector.load %arg6[%c0_9, %c0_10] : memref<1x256xf32, #tpu.memory_space<vmem>>, vector<1x256xf32>
    %12 = vector.broadcast %11 : vector<1x256xf32> to vector<8x256xf32>
    %13 = arith.addf %10, %12 : vector<8x256xf32>
    %14 = vector.extract_strided_slice %13 {offsets = [0, 0], sizes = [8, 128], strides = [1, 1]} : vector<8x256xf32> to vector<8x128xf32>
    %15 = vector.extract_strided_slice %13 {offsets = [0, 128], sizes = [8, 128], strides = [1, 1]} : vector<8x256xf32> to vector<8x128xf32>
    %cst_11 = arith.constant 5.000000e-01 : f32
    %16 = vector.broadcast %cst_11 : f32 to vector<8x128xf32>
    %17 = arith.mulf %16, %15 : vector<8x128xf32>
    %18 = math.exp %17 : vector<8x128xf32>
    %c0_12 = arith.constant 0 : index
    %c0_13 = arith.constant 0 : index
    %19 = vector.load %arg2[%c0_12, %c0_13] : memref<8x128xf32, #tpu.memory_space<vmem>>, vector<8x128xf32>
    %20 = arith.mulf %19, %18 : vector<8x128xf32>
    %21 = arith.addf %20, %14 : vector<8x128xf32>
    %22 = arith.truncf %21 : vector<8x128xf32> to vector<8x128xbf16>
    %c0_14 = arith.constant 0 : index
    %c0_15 = arith.constant 0 : index
    %23 = vector.load %arg7[%c0_14, %c0_15] : memref<128x512xbf16, #tpu.memory_space<vmem>>, vector<128x512xbf16>
    %cst_16 = arith.constant dense<0.000000e+00> : vector<8x512xf32>
    %24 = tpu.matmul %22, %23, %cst_16 {dimension_numbers = #tpu.dot_dimension_numbers<[1], [0], [0], [1], [0, 0, 1, 1], [], []>} : vector<8x128xbf16>, vector<128x512xbf16>, vector<8x512xf32> -> vector<8x512xf32>
    %c0_17 = arith.constant 0 : index
    %c0_18 = arith.constant 0 : index
    %25 = vector.load %arg8[%c0_17, %c0_18] : memref<1x512xf32, #tpu.memory_space<vmem>>, vector<1x512xf32>
    %26 = vector.broadcast %25 : vector<1x512xf32> to vector<8x512xf32>
    %27 = arith.addf %24, %26 : vector<8x512xf32>
    %cst_19 = arith.constant 0.000000e+00 : f32
    %28 = vector.broadcast %cst_19 : f32 to vector<8x512xf32>
    %29 = arith.maximumf %27, %28 : vector<8x512xf32>
    %30 = arith.truncf %29 : vector<8x512xf32> to vector<8x512xbf16>
    %c0_20 = arith.constant 0 : index
    %c0_21 = arith.constant 0 : index
    %31 = vector.load %arg9[%c0_20, %c0_21] : memref<512x896xbf16, #tpu.memory_space<vmem>>, vector<512x896xbf16>
    %cst_22 = arith.constant dense<0.000000e+00> : vector<8x896xf32>
    %32 = tpu.matmul %30, %31, %cst_22 {dimension_numbers = #tpu.dot_dimension_numbers<[1], [0], [0], [1], [0, 0, 1, 1], [], []>} : vector<8x512xbf16>, vector<512x896xbf16>, vector<8x896xf32> -> vector<8x896xf32>
    %c0_23 = arith.constant 0 : index
    %c0_24 = arith.constant 0 : index
    %33 = vector.load %arg10[%c0_23, %c0_24] : memref<1x896xf32, #tpu.memory_space<vmem>>, vector<1x896xf32>
    %34 = vector.broadcast %33 : vector<1x896xf32> to vector<8x896xf32>
    %35 = arith.addf %32, %34 : vector<8x896xf32>
    %36 = math.tanh %35 : vector<8x896xf32>
    %37 = arith.truncf %36 : vector<8x896xf32> to vector<8x896xbf16>
    %c0_25 = arith.constant 0 : index
    %c0_26 = arith.constant 0 : index
    %38 = vector.load %arg11[%c0_25, %c0_26] : memref<8x896xbf16, #tpu.memory_space<vmem>>, vector<8x896xbf16>
    tpu.vector_store %arg11[%c0_25, %c0_26], %37 {strides = array<i32>} : memref<8x896xbf16, #tpu.memory_space<vmem>>, vector<8x896xbf16>,
    %c0_27 = arith.constant 0 : index
    %c0_28 = arith.constant 0 : index
    %39 = vector.load %arg12[%c0_27, %c0_28] : memref<8x256xf32, #tpu.memory_space<vmem>>, vector<8x256xf32>
    tpu.vector_store %arg12[%c0_27, %c0_28], %13 {strides = array<i32>} : memref<8x256xf32, #tpu.memory_space<vmem>>, vector<8x256xf32>,
    return
  }
  func.func @transform_0(%arg0: i32) -> (i32, i32) {
    %c0_i32 = arith.constant 0 : i32
    %c0_i32_0 = arith.constant 0 : i32
    return %arg0, %c0_i32 : i32, i32
  }
  func.func @transform_1(%arg0: i32) -> (i32, i32) {
    %c0_i32 = arith.constant 0 : i32
    %c0_i32_0 = arith.constant 0 : i32
    return %arg0, %c0_i32 : i32, i32
  }
  func.func @transform_2(%arg0: i32) -> (i32, i32) {
    %c0_i32 = arith.constant 0 : i32
    %c0_i32_0 = arith.constant 0 : i32
    %c0_i32_1 = arith.constant 0 : i32
    return %c0_i32, %c0_i32_0 : i32, i32
  }
  func.func @transform_3(%arg0: i32) -> (i32, i32) {
    %c0_i32 = arith.constant 0 : i32
    %c0_i32_0 = arith.constant 0 : i32
    %c0_i32_1 = arith.constant 0 : i32
    return %c0_i32, %c0_i32_0 : i32, i32
  }
  func.func @transform_4(%arg0: i32) -> (i32, i32) {
    %c0_i32 = arith.constant 0 : i32
    %c0_i32_0 = arith.constant 0 : i32
    %c0_i32_1 = arith.constant 0 : i32
    return %c0_i32, %c0_i32_0 : i32, i32
  }
  func.func @transform_5(%arg0: i32) -> (i32, i32) {
    %c0_i32 = arith.constant 0 : i32
    %c0_i32_0 = arith.constant 0 : i32
    %c0_i32_1 = arith.constant 0 : i32
    return %c0_i32, %c0_i32_0 : i32, i32
  }
  func.func @transform_6(%arg0: i32) -> (i32, i32) {
    %c0_i32 = arith.constant 0 : i32
    %c0_i32_0 = arith.constant 0 : i32
    %c0_i32_1 = arith.constant 0 : i32
    return %c0_i32, %c0_i32_0 : i32, i32
  }
  func.func @transform_7(%arg0: i32) -> (i32, i32) {
    %c0_i32 = arith.constant 0 : i32
    %c0_i32_0 = arith.constant 0 : i32
    %c0_i32_1 = arith.constant 0 : i32
    return %c0_i32, %c0_i32_0 : i32, i32
  }
  func.func @transform_8(%arg0: i32) -> (i32, i32) {
    %c0_i32 = arith.constant 0 : i32
    %c0_i32_0 = arith.constant 0 : i32
    %c0_i32_1 = arith.constant 0 : i32
    return %c0_i32, %c0_i32_0 : i32, i32
  }
  func.func @transform_9(%arg0: i32) -> (i32, i32) {
    %c0_i32 = arith.constant 0 : i32
    %c0_i32_0 = arith.constant 0 : i32
    %c0_i32_1 = arith.constant 0 : i32
    return %c0_i32, %c0_i32_0 : i32, i32
  }
  func.func @transform_10(%arg0: i32) -> (i32, i32) {
    %c0_i32 = arith.constant 0 : i32
    %c0_i32_0 = arith.constant 0 : i32
    return %arg0, %c0_i32 : i32, i32
  }
  func.func @transform_11(%arg0: i32) -> (i32, i32) {
    %c0_i32 = arith.constant 0 : i32
    %c0_i32_0 = arith.constant 0 : i32
    return %arg0, %c0_i32 : i32, i32
  }
}

</mosaic_0001>

<bundles_post_ra>
// kernel: tpu_custom_call.1
= control target key start
LH: loop header
LB: loop body
LE: loop exit
PB: predicated region body
PF: predicated region fallthrough
CT: control target
= control target key end

     0   :  { %17 = vsyncpa [#allocation3], 0  ;;  %s6466_s0 = inlined_call_operand.hbm [shape: bf16[8,896], index: 0, kind: input, shape index: {}]   ;;  %s6467_s1 = inlined_call_operand.hbm [shape: f32[8,128], index: 1, kind: input, shape index: {}]   ;;  %s6468_s2 = inlined_call_operand.hbm [shape: bf16[896,512], index: 2, kind: input, shape index: {}]   ;;  %s6469_s3 = inlined_call_operand.vmem [shape: f32[1,512], index: 3, kind: input, shape index: {}]   ;;  %s6470_s4 = inlined_call_operand.hbm [shape: bf16[512,256], index: 4, kind: input, shape index: {}]   ;;  %s6471_s5 = inlined_call_operand.vmem [shape: f32[1,256], index: 5, kind: input, shape index: {}]   ;;  %s6472_s6 = inlined_call_operand.hbm [shape: bf16[128,512], index: 6, kind: input, shape index: {}]   ;;  %s6473_s7 = inlined_call_operand.vmem [shape: f32[1,512], index: 7, kind: input, shape index: {}]   ;;  %s6474_s8 = inlined_call_operand.hbm [shape: bf16[512,896], index: 8, kind: input, shape index: {}]   ;;  %s6475_s9 = inlined_call_operand.vmem [shape: f32[1,896], index: 9, kind: input, shape index: {}]   ;;  %s6476_s10 = inlined_call_operand.hbm [shape: bf16[8,896], index: 10, kind: output, shape index: {0}]   ;;  %s6477_s11 = inlined_call_operand.hbm [shape: f32[8,256], index: 11, kind: output, shape index: {1}]  }
   0x1   :  { %18 = vsyncpa [#allocation6], 0 }
   0x2   :  { %19 = vsyncpa [#allocation9], 0 }
   0x3   :  { %20 = vsyncpa [#allocation12], 0 }
   0x4   :  { %21 = vsyncpa [#allocation4], 0 }
   0x5   :  { %22 = vsyncpa [#allocation15], 0  ;;  %s6164_s17 = smov [#allocation5]   ;;  %s6165_s19 = smov [#allocation8]  }
   0x6   :  { %s39_s18 = sshll.u32 %s6164_s17, 4  ;;  %s62_s20 = sshll.u32 %s6165_s19, 4  ;;  %s40_s18 = int_to_ptr.vmem [resolvable:$true] %s39_s18  ;;  %s6239_s20 = int_to_ptr.vmem [resolvable:$true] %s62_s20 }
   0x7   :  { %s5976_s23 = scalar_lea.hbm %s6467_s1, 128 }
   0x8   :  { %p5977_p0 = scmp.ne.s32.totalorder %s6467_s1, %s5976_s23  ;;  %p5980_p1 = scmp.lt.u32.totalorder %s5976_s23, %s6467_s1 }
   0xa   :  { %p5982_p2 = pnand %p5980_p1, %p5977_p0 }
   0xc   :  { %5985 = shalt.err (!%p5982_p2)
}
   0xd   :  { %s5986_s28 = scalar_lea.vmem %s40_s18, 128  ;;  %p5991_p4 = scmp.lt.s32.totalorder %s40_s18, %s40_s18 }
   0xe   :  { %p5987_p3 = scmp.ne.s32.totalorder %s40_s18, %s5986_s28  ;;  %p5992_p5 = scmp.lt.s32.totalorder %s5986_s28, %s5986_s28 }
  0x10   :  { %p5993_p6 = por %p5992_p5, %p5991_p4 }
  0x12   :  { %p5994_p7 = pnand %p5993_p6, %p5987_p3 }
  0x14   :  { %5997 = shalt.err (!%p5994_p7)
}
  0x15   :  { %42 = dma.hbm_to_vmem [thread:$0]  %s6467_s1, 128, %s40_s18, [#allocation6]  }
  0x16   :  { %s5998_s14 = scalar_lea.hbm %s6470_s4, 8192 }
  0x17   :  { %p5999_p8 = scmp.ne.s32.totalorder %s6470_s4, %s5998_s14  ;;  %p6002_p9 = scmp.lt.u32.totalorder %s5998_s14, %s6470_s4 }
  0x19   :  { %p6004_p10 = pnand %p6002_p9, %p5999_p8 }
  0x1b   :  { %6007 = shalt.err (!%p6004_p10)
}
  0x1c   :  { %s6008_s21 = scalar_lea.vmem %s6239_s20, 8192  ;;  %p6013_p12 = scmp.lt.s32.totalorder %s6239_s20, %s6239_s20 }
  0x1d   :  { %p6009_p11 = scmp.ne.s32.totalorder %s6239_s20, %s6008_s21  ;;  %p6014_p13 = scmp.lt.s32.totalorder %s6008_s21, %s6008_s21 }
  0x1f   :  { %p6015_p0 = por %p6014_p13, %p6013_p12 }
  0x21   :  { %p6016_p1 = pnand %p6015_p0, %p6009_p11 }
  0x23   :  { %6019 = shalt.err (!%p6016_p1)
}
  0x24   :  { %s6166_s1 = smov 128   ;;  %s6167_s18 = smov 8  }
  0x25   :  { %68 = dma.hbm_to_vmem [thread:$0]  %s6470_s4, 8192, %s6239_s20, [#allocation9], %s6166_s1, %s6166_s1, %s6167_s18  }
  0x26   :  { %s6168_s24 = smov [#allocation2]   ;;  %s6169_s26 = smov [#allocation7]  }
  0x27   :  { %s29_s25 = sshll.u32 %s6168_s24, 4  ;;  %s48_s27 = sshll.u32 %s6169_s26, 4  ;;  %s30_s25 = int_to_ptr.vmem [resolvable:$true] %s29_s25  ;;  %s6270_s27 = int_to_ptr.vmem [resolvable:$true] %s48_s27 }
  0x28   :  { %s6020_s30 = scalar_lea.hbm %s6466_s0, 448 }
  0x29   :  { %p6021_p2 = scmp.ne.s32.totalorder %s6466_s0, %s6020_s30  ;;  %p6024_p3 = scmp.lt.u32.totalorder %s6020_s30, %s6466_s0 }
  0x2b   :  { %p6026_p4 = pnand %p6024_p3, %p6021_p2 }
  0x2d   :  { %6029 = shalt.err (!%p6026_p4)
}
  0x2e   :  { %s6030_s4 = scalar_lea.vmem %s30_s25, 448  ;;  %p6035_p6 = scmp.lt.s32.totalorder %s30_s25, %s30_s25 }
  0x2f   :  { %p6031_p5 = scmp.ne.s32.totalorder %s30_s25, %s6030_s4  ;;  %p6036_p7 = scmp.lt.s32.totalorder %s6030_s4, %s6030_s4 }
  0x31   :  { %p6037_p8 = por %p6036_p7, %p6035_p6 }
  0x33   :  { %p6038_p9 = pnand %p6037_p8, %p6031_p5 }
  0x35   :  { %6041 = shalt.err (!%p6038_p9)
}
  0x36   :  { %32 = dma.hbm_to_vmem [thread:$0]  %s6466_s0, 448, %s30_s25, [#allocation3]  }
  0x37   :  { %s6042_s21 = scalar_lea.hbm %s6468_s2, 28672 }
  0x38   :  { %p6043_p10 = scmp.ne.s32.totalorder %s6468_s2, %s6042_s21  ;;  %p6046_p11 = scmp.lt.u32.totalorder %s6042_s21, %s6468_s2 }
  0x3a   :  { %p6048_p12 = pnand %p6046_p11, %p6043_p10 }
  0x3c   :  { %6051 = shalt.err (!%p6048_p12)
}
  0x3d   :  { %s6052_s24 = scalar_lea.vmem %s6270_s27, 28672  ;;  %p6057_p0 = scmp.lt.s32.totalorder %s6270_s27, %s6270_s27 }
  0x3e   :  { %p6053_p13 = scmp.ne.s32.totalorder %s6270_s27, %s6052_s24  ;;  %p6058_p1 = scmp.lt.s32.totalorder %s6052_s24, %s6052_s24 }
  0x40   :  { %p6059_p2 = por %p6058_p1, %p6057_p0 }
  0x42   :  { %p6060_p3 = pnand %p6059_p2, %p6053_p13 }
  0x44   :  { %6063 = shalt.err (!%p6060_p3)
}
  0x45   :  { %s6170_s0 = smov 256   ;;  %s6171_s25 = smov 16  }
  0x46   :  { %54 = dma.hbm_to_vmem [thread:$0]  %s6468_s2, 28672, %s6270_s27, [#allocation6], %s6170_s0, %s6170_s0, %s6171_s25  }
  0x47   :  { %s6172_s29 = smov [#allocation10]   ;;  %s6173_s12 = smov [#allocation11]  }
  0x48   :  { %s76_s30 = sshll.u32 %s6172_s29, 4  ;;  %s90_s13 = sshll.u32 %s6173_s12, 4  ;;  %s77_s30 = int_to_ptr.vmem [resolvable:$true] %s76_s30  ;;  %s6301_s13 = int_to_ptr.vmem [resolvable:$true] %s90_s13 }
  0x49   :  { %s6064_s4 = scalar_lea.hbm %s6472_s6, 4096 }
  0x4a   :  { %p6065_p4 = scmp.ne.s32.totalorder %s6472_s6, %s6064_s4  ;;  %p6068_p5 = scmp.lt.u32.totalorder %s6064_s4, %s6472_s6 }
  0x4c   :  { %p6070_p6 = pnand %p6068_p5, %p6065_p4 }
  0x4e   :  { %6073 = shalt.err (!%p6070_p6)
}
  0x4f   :  { %s6074_s2 = scalar_lea.vmem %s77_s30, 4096  ;;  %p6079_p8 = scmp.lt.s32.totalorder %s77_s30, %s77_s30 }
  0x50   :  { %p6075_p7 = scmp.ne.s32.totalorder %s77_s30, %s6074_s2  ;;  %p6080_p9 = scmp.lt.s32.totalorder %s6074_s2, %s6074_s2 }
  0x52   :  { %p6081_p10 = por %p6080_p9, %p6079_p8 }
  0x54   :  { %p6082_p11 = pnand %p6081_p10, %p6075_p7 }
  0x56   :  { %6085 = shalt.err (!%p6082_p11)
}
  0x57   :  { %82 = dma.hbm_to_vmem [thread:$0]  %s6472_s6, 4096, %s77_s30, [#allocation9], %s6170_s0, %s6170_s0, %s6171_s25  }
  0x58   :  { %s6086_s22 = scalar_lea.hbm %s6474_s8, 28672 }
  0x59   :  { %p6087_p12 = scmp.ne.s32.totalorder %s6474_s8, %s6086_s22  ;;  %p6090_p13 = scmp.lt.u32.totalorder %s6086_s22, %s6474_s8 }
  0x5b   :  { %p6092_p0 = pnand %p6090_p13, %p6087_p12 }
  0x5d   :  { %6095 = shalt.err (!%p6092_p0)
}
  0x5e   :  { %s6096_s29 = scalar_lea.vmem %s6301_s13, 28672  ;;  %p6101_p2 = scmp.lt.s32.totalorder %s6301_s13, %s6301_s13 }
  0x5f   :  { %p6097_p1 = scmp.ne.s32.totalorder %s6301_s13, %s6096_s29  ;;  %p6102_p3 = scmp.lt.s32.totalorder %s6096_s29, %s6096_s29 }
  0x61   :  { %p6103_p4 = por %p6102_p3, %p6101_p2 }
  0x63   :  { %p6104_p5 = pnand %p6103_p4, %p6097_p1 }
  0x65   :  { %6107 = shalt.err (!%p6104_p5)
}
  0x66   :  { %s6174_s6 = smov 448   ;;  %s6175_s0 = smov 28  }
  0x67   :  { %96 = dma.hbm_to_vmem [thread:$0]  %s6474_s8, 28672, %s6301_s13, [#allocation12], %s6174_s6, %s6174_s6, %s6175_s0  }
  0x68   :  { %6152 = dma.done.wait [#allocation3], 448  }
  0x69   :  { %6153 = vsyncadd [#allocation3], 4294966848 }
  0x6a   :  { %6154 = dma.done.wait [#allocation6], 28800  }
  0x6b   :  { %6155 = vsyncadd [#allocation6], 4294938496 }
  0x6c   :  { %6156 = dma.done.wait [#allocation9], 12288  }
  0x6d   :  { %6157 = vsyncadd [#allocation9], 4294955008 }
  0x6e   :  { %6158 = dma.done.wait [#allocation12], 28672  }
  0x6f   :  { %6159 = vsyncadd [#allocation12], 4294938624  ;;  %v5153_v0 = vld [vmem:[#allocation7 + $0x4] ss:$16 sps:$4 sm:$0xff]   ;;  %v5155_v1 = vld [vmem:[#allocation7 + $0xc] ss:$16 sps:$4 sm:$0xff]  }
  0x70   :  { %1513 = vmatprep.subr.bf16.mxu0 %v5153_v0  ;;  %v5157_v2 = vld [vmem:[#allocation7] ss:$16 sps:$4 sm:$0xff]   ;;  %v5158_v3 = vld [vmem:[#allocation7 + $0x8] ss:$16 sps:$4 sm:$0xff]   ;;  %1677 = vmatprep.subr.bf16.mxu1 %v5155_v1  ;;  %v5159_v4 = vld [vmem:[#allocation7 + $0x24] ss:$16 sps:$4 sm:$0xff]  }
  0x71   :  { %1514 = vmatpush1.bf16.msra.mxu0 %v5157_v2  ;;  %1678 = vmatpush1.bf16.msra.mxu1 %v5158_v3  ;;  %v5161_v5 = vld [vmem:[#allocation7 + $0x2c] ss:$16 sps:$4 sm:$0xff]   ;;  %v5163_v6 = vld [vmem:[#allocation7 + $0x20] ss:$16 sps:$4 sm:$0xff]   ;;  %v5164_v7 = vld [vmem:[#allocation7 + $0x28] ss:$16 sps:$4 sm:$0xff]  }
  0x72   :  { %1515 = vmatprep.subr.bf16.mxu0 %v5159_v4  ;;  %1679 = vmatprep.subr.bf16.mxu1 %v5161_v5  ;;  %v5165_v8 = vld [vmem:[#allocation7 + $0x44] ss:$16 sps:$4 sm:$0xff]   ;;  %v5167_v9 = vld [vmem:[#allocation7 + $0x4c] ss:$16 sps:$4 sm:$0xff]   ;;  %v5169_v10 = vld [vmem:[#allocation7 + $0x40] ss:$16 sps:$4 sm:$0xff]  }
  0x73   :  { %v5170_v11 = vld [vmem:[#allocation7 + $0x48] ss:$16 sps:$4 sm:$0xff]   ;;  %v5171_v12 = vld [vmem:[#allocation7 + $0x64] ss:$16 sps:$4 sm:$0xff]   ;;  %v5173_v13 = vld [vmem:[#allocation7 + $0x6c] ss:$16 sps:$4 sm:$0xff]  }
  0x74   :  { %v5175_v14 = vld [vmem:[#allocation7 + $0x60] ss:$16 sps:$4 sm:$0xff]   ;;  %v5176_v15 = vld [vmem:[#allocation7 + $0x68] ss:$16 sps:$4 sm:$0xff]   ;;  %v5177_v16 = vld [vmem:[#allocation7 + $0x84] ss:$16 sps:$4 sm:$0xff]  }
  0x75   :  { %1516 = vmatpush1.bf16.msra.mxu0 %v5163_v6  ;;  %1680 = vmatpush1.bf16.msra.mxu1 %v5164_v7  ;;  %v5179_v17 = vld [vmem:[#allocation7 + $0x8c] ss:$16 sps:$4 sm:$0xff]   ;;  %v5181_v18 = vld [vmem:[#allocation7 + $0x80] ss:$16 sps:$4 sm:$0xff]   ;;  %v5182_v19 = vld [vmem:[#allocation7 + $0x88] ss:$16 sps:$4 sm:$0xff]  }
  0x76   :  { %1517 = vmatprep.subr.bf16.mxu0 %v5165_v8  ;;  %1681 = vmatprep.subr.bf16.mxu1 %v5167_v9  ;;  %v5183_v20 = vld [vmem:[#allocation7 + $0xa4] ss:$16 sps:$4 sm:$0xff]   ;;  %v5185_v21 = vld [vmem:[#allocation7 + $0xac] ss:$16 sps:$4 sm:$0xff]   ;;  %v5187_v22 = vld [vmem:[#allocation7 + $0xa0] ss:$16 sps:$4 sm:$0xff]  }
  0x77   :  { %v5188_v23 = vld [vmem:[#allocation7 + $0xa8] ss:$16 sps:$4 sm:$0xff]   ;;  %v5189_v24 = vld [vmem:[#allocation7 + $0xc4] ss:$16 sps:$4 sm:$0xff]   ;;  %v5191_v25 = vld [vmem:[#allocation7 + $0xcc] ss:$16 sps:$4 sm:$0xff]  }
  0x78   :  { %v5193_v26 = vld [vmem:[#allocation7 + $0xc0] ss:$16 sps:$4 sm:$0xff]   ;;  %v5194_v27 = vld [vmem:[#allocation7 + $0xc8] ss:$16 sps:$4 sm:$0xff]   ;;  %v5195_v28 = vld [vmem:[#allocation7 + $0xe4] ss:$16 sps:$4 sm:$0xff]  }
  0x79   :  { %1518 = vmatpush1.bf16.msra.mxu0 %v5169_v10  ;;  %1682 = vmatpush1.bf16.msra.mxu1 %v5170_v11  ;;  %v5197_v29 = vld [vmem:[#allocation7 + $0xec] ss:$16 sps:$4 sm:$0xff]   ;;  %v5199_v30 = vld [vmem:[#allocation7 + $0xe0] ss:$16 sps:$4 sm:$0xff]   ;;  %v5200_v31 = vld [vmem:[#allocation7 + $0xe8] ss:$16 sps:$4 sm:$0xff]  }
  0x7a   :  { %1519 = vmatprep.subr.bf16.mxu0 %v5171_v12  ;;  %1683 = vmatprep.subr.bf16.mxu1 %v5173_v13  ;;  %v5201_v32 = vld [vmem:[#allocation7 + $0x104] ss:$16 sps:$4 sm:$0xff]   ;;  %v5203_v33 = vld [vmem:[#allocation7 + $0x10c] ss:$16 sps:$4 sm:$0xff]   ;;  %v5205_v34 = vld [vmem:[#allocation7 + $0x100] ss:$16 sps:$4 sm:$0xff]  }
  0x7b   :  { %v5206_v35 = vld [vmem:[#allocation7 + $0x108] ss:$16 sps:$4 sm:$0xff]   ;;  %v5207_v36 = vld [vmem:[#allocation7 + $0x124] ss:$16 sps:$4 sm:$0xff]   ;;  %v5209_v37 = vld [vmem:[#allocation7 + $0x12c] ss:$16 sps:$4 sm:$0xff]  }
  0x7c   :  { %v5211_v38 = vld [vmem:[#allocation7 + $0x120] ss:$16 sps:$4 sm:$0xff]   ;;  %v5212_v39 = vld [vmem:[#allocation7 + $0x128] ss:$16 sps:$4 sm:$0xff]   ;;  %v5213_v40 = vld [vmem:[#allocation7 + $0x144] ss:$16 sps:$4 sm:$0xff]  }
  0x7d   :  { %1520 = vmatpush1.bf16.msra.mxu0 %v5175_v14  ;;  %1684 = vmatpush1.bf16.msra.mxu1 %v5176_v15  ;;  %v5215_v41 = vld [vmem:[#allocation7 + $0x14c] ss:$16 sps:$4 sm:$0xff]   ;;  %v5217_v42 = vld [vmem:[#allocation7 + $0x140] ss:$16 sps:$4 sm:$0xff]   ;;  %v5218_v43 = vld [vmem:[#allocation7 + $0x148] ss:$16 sps:$4 sm:$0xff]  }
  0x7e   :  { %1521 = vmatprep.subr.bf16.mxu0 %v5177_v16  ;;  %1685 = vmatprep.subr.bf16.mxu1 %v5179_v17  ;;  %v5219_v44 = vld [vmem:[#allocation7 + $0x164] ss:$16 sps:$4 sm:$0xff]   ;;  %v5221_v45 = vld [vmem:[#allocation7 + $0x16c] ss:$16 sps:$4 sm:$0xff]   ;;  %v5223_v47 = vld [vmem:[#allocation7 + $0x160] ss:$16 sps:$4 sm:$0xff]  }
  0x7f   :  { %v118_v46 = vld [vmem:[#allocation2] sm:$0xff]  ;;  %v5224_v49 = vld [vmem:[#allocation7 + $0x168] ss:$16 sps:$4 sm:$0xff]   ;;  %v5225_v50 = vld [vmem:[#allocation7 + $0x184] ss:$16 sps:$4 sm:$0xff]  }
  0x80   :  { %v4484_v48 = vcombine.high %v118_v46, %v118_v46  ;;  %v5227_v51 = vld [vmem:[#allocation7 + $0x18c] ss:$16 sps:$4 sm:$0xff]   ;;  %v5229_v52 = vld [vmem:[#allocation7 + $0x180] ss:$16 sps:$4 sm:$0xff]   ;;  %v5230_v53 = vld [vmem:[#allocation7 + $0x188] ss:$16 sps:$4 sm:$0xff]   ;;  %v4483_v4 = vcombine.low %v118_v46, %v118_v46 }
  0x81   :  { %1522 = vmatpush1.bf16.msra.mxu0 %v5181_v18  ;;  %1686 = vmatpush1.bf16.msra.mxu1 %v5182_v19  ;;  %v5231_v54 = vld [vmem:[#allocation7 + $0x1a4] ss:$16 sps:$4 sm:$0xff]   ;;  %v5233_v55 = vld [vmem:[#allocation7 + $0x1ac] ss:$16 sps:$4 sm:$0xff]   ;;  %v5235_v56 = vld [vmem:[#allocation7 + $0x1a0] ss:$16 sps:$4 sm:$0xff]  }
  0x82   :  { %1523 = vmatprep.subr.bf16.mxu0 %v5183_v20  ;;  %1687 = vmatprep.subr.bf16.mxu1 %v5185_v21  ;;  %v5236_v57 = vld [vmem:[#allocation7 + $0x1a8] ss:$16 sps:$4 sm:$0xff]   ;;  %v5237_v58 = vld [vmem:[#allocation7 + $0x1c4] ss:$16 sps:$4 sm:$0xff]   ;;  %v5239_v59 = vld [vmem:[#allocation7 + $0x1cc] ss:$16 sps:$4 sm:$0xff]  }
  0x83   :  { %1545 = vmatprep.mubr.bf16.mxu0 %v4484_v48  ;;  %1709 = vmatprep.mubr.bf16.mxu1 %v4484_v48  ;;  %v5241_v60 = vld [vmem:[#allocation7 + $0x1c0] ss:$16 sps:$4 sm:$0xff]   ;;  %v5242_v61 = vld [vmem:[#allocation7 + $0x1c8] ss:$16 sps:$4 sm:$0xff]   ;;  %v5243_v62 = vld [vmem:[#allocation7 + $0x1e4] ss:$16 sps:$4 sm:$0xff]  }
  0x84   :  { %v5245_v63 = vld [vmem:[#allocation7 + $0x1ec] ss:$16 sps:$4 sm:$0xff]   ;;  %v5247_v0 = vld [vmem:[#allocation7 + $0x1e0] ss:$16 sps:$4 sm:$0xff]   ;;  %v5248_v1 = vld [vmem:[#allocation7 + $0x1e8] ss:$16 sps:$4 sm:$0xff]  }
  0x85   :  { %1524 = vmatpush1.bf16.msra.mxu0 %v5187_v22  ;;  %1688 = vmatpush1.bf16.msra.mxu1 %v5188_v23  ;;  %v5253_v2 = vld [vmem:[#allocation7 + $0x204] ss:$16 sps:$4 sm:$0xff]   ;;  %v5256_v3 = vld [vmem:[#allocation7 + $0x20c] ss:$16 sps:$4 sm:$0xff]   ;;  %v5251_v5 = vld [vmem:[#allocation7 + $0x200] ss:$16 sps:$4 sm:$0xff]  }
  0x86   :  { %1525 = vmatprep.subr.bf16.mxu0 %v5189_v24  ;;  %1689 = vmatprep.subr.bf16.mxu1 %v5191_v25  ;;  %v5254_v6 = vld [vmem:[#allocation7 + $0x208] ss:$16 sps:$4 sm:$0xff]   ;;  %v5259_v7 = vld [vmem:[#allocation7 + $0x224] ss:$16 sps:$4 sm:$0xff]   ;;  %v5262_v8 = vld [vmem:[#allocation7 + $0x22c] ss:$16 sps:$4 sm:$0xff]  }
  0x87   :  { %v5257_v9 = vld [vmem:[#allocation7 + $0x220] ss:$16 sps:$4 sm:$0xff]   ;;  %v5260_v10 = vld [vmem:[#allocation7 + $0x228] ss:$16 sps:$4 sm:$0xff]   ;;  %v5265_v11 = vld [vmem:[#allocation7 + $0x244] ss:$16 sps:$4 sm:$0xff]  }
  0x88   :  { %v5268_v12 = vld [vmem:[#allocation7 + $0x24c] ss:$16 sps:$4 sm:$0xff]   ;;  %v5263_v13 = vld [vmem:[#allocation7 + $0x240] ss:$16 sps:$4 sm:$0xff]   ;;  %v5266_v14 = vld [vmem:[#allocation7 + $0x248] ss:$16 sps:$4 sm:$0xff]  }
  0x89   :  { %1526 = vmatpush1.bf16.msra.mxu0 %v5193_v26  ;;  %1690 = vmatpush1.bf16.msra.mxu1 %v5194_v27  ;;  %v5271_v15 = vld [vmem:[#allocation7 + $0x264] ss:$16 sps:$4 sm:$0xff]   ;;  %v5274_v16 = vld [vmem:[#allocation7 + $0x26c] ss:$16 sps:$4 sm:$0xff]   ;;  %v5269_v17 = vld [vmem:[#allocation7 + $0x260] ss:$16 sps:$4 sm:$0xff]  }
  0x8a   :  { %1527 = vmatprep.subr.bf16.mxu0 %v5195_v28  ;;  %1691 = vmatprep.subr.bf16.mxu1 %v5197_v29  ;;  %v5272_v18 = vld [vmem:[#allocation7 + $0x268] ss:$16 sps:$4 sm:$0xff]   ;;  %v5277_v19 = vld [vmem:[#allocation7 + $0x284] ss:$16 sps:$4 sm:$0xff]   ;;  %v5280_v20 = vld [vmem:[#allocation7 + $0x28c] ss:$16 sps:$4 sm:$0xff]  }
  0x8b   :  { %v5275_v21 = vld [vmem:[#allocation7 + $0x280] ss:$16 sps:$4 sm:$0xff]   ;;  %v5278_v22 = vld [vmem:[#allocation7 + $0x288] ss:$16 sps:$4 sm:$0xff]   ;;  %v5283_v23 = vld [vmem:[#allocation7 + $0x2a4] ss:$16 sps:$4 sm:$0xff]  }
  0x8c   :  { %v5286_v24 = vld [vmem:[#allocation7 + $0x2ac] ss:$16 sps:$4 sm:$0xff]   ;;  %v5281_v25 = vld [vmem:[#allocation7 + $0x2a0] ss:$16 sps:$4 sm:$0xff]   ;;  %v5284_v26 = vld [vmem:[#allocation7 + $0x2a8] ss:$16 sps:$4 sm:$0xff]  }
  0x8d   :  { %1528 = vmatpush1.bf16.msra.mxu0 %v5199_v30  ;;  %1692 = vmatpush1.bf16.msra.mxu1 %v5200_v31  ;;  %v5289_v27 = vld [vmem:[#allocation7 + $0x2c4] ss:$16 sps:$4 sm:$0xff]   ;;  %v5292_v28 = vld [vmem:[#allocation7 + $0x2cc] ss:$16 sps:$4 sm:$0xff]   ;;  %v5287_v31 = vld [vmem:[#allocation7 + $0x2c0] ss:$16 sps:$4 sm:$0xff]  }
  0x8e   :  { %1529 = vmatprep.subr.bf16.mxu0 %v5201_v32  ;;  %1693 = vmatprep.subr.bf16.mxu1 %v5203_v33  ;;  %v6332_v29 = vld [vmem:[#allocation2 + $0x8] sm:$0xff]  ;;  %v5316_v46 = vld [vmem:[#allocation7 + $0x34c] ss:$16 sps:$4 sm:$0xff]  }
  0x8f   :  { %v4486_v30 = vcombine.high %v6332_v29, %v6332_v29  ;;  %v5290_v32 = vld [vmem:[#allocation7 + $0x2c8] ss:$16 sps:$4 sm:$0xff]   ;;  %v5295_v33 = vld [vmem:[#allocation7 + $0x2e4] ss:$16 sps:$4 sm:$0xff]  }
  0x90   :  { %v5314_v48 = vld [vmem:[#allocation7 + $0x348] ss:$16 sps:$4 sm:$0xff]  }
  0x91   :  { %1530 = vmatpush1.bf16.msra.mxu0 %v5205_v34  ;;  %1694 = vmatpush1.bf16.msra.mxu1 %v5206_v35  ;;  %v5298_v34 = vld [vmem:[#allocation7 + $0x2ec] ss:$16 sps:$4 sm:$0xff]   ;;  %v5293_v35 = vld [vmem:[#allocation7 + $0x2e0] ss:$16 sps:$4 sm:$0xff]  }
  0x92   :  { %1531 = vmatprep.subr.bf16.mxu0 %v5207_v36  ;;  %1695 = vmatprep.subr.bf16.mxu1 %v5209_v37  ;;  %v5296_v36 = vld [vmem:[#allocation7 + $0x2e8] ss:$16 sps:$4 sm:$0xff]   ;;  %v5301_v37 = vld [vmem:[#allocation7 + $0x304] ss:$16 sps:$4 sm:$0xff]  }
  0x95   :  { %1532 = vmatpush1.bf16.msra.mxu0 %v5211_v38  ;;  %1696 = vmatpush1.bf16.msra.mxu1 %v5212_v39  ;;  %v5304_v38 = vld [vmem:[#allocation7 + $0x30c] ss:$16 sps:$4 sm:$0xff]   ;;  %v5299_v39 = vld [vmem:[#allocation7 + $0x300] ss:$16 sps:$4 sm:$0xff]  }
  0x96   :  { %1533 = vmatprep.subr.bf16.mxu0 %v5213_v40  ;;  %1697 = vmatprep.subr.bf16.mxu1 %v5215_v41  ;;  %v5302_v40 = vld [vmem:[#allocation7 + $0x308] ss:$16 sps:$4 sm:$0xff]   ;;  %v5307_v41 = vld [vmem:[#allocation7 + $0x324] ss:$16 sps:$4 sm:$0xff]  }
  0x99   :  { %1534 = vmatpush1.bf16.msra.mxu0 %v5217_v42  ;;  %1698 = vmatpush1.bf16.msra.mxu1 %v5218_v43  ;;  %v5310_v42 = vld [vmem:[#allocation7 + $0x32c] ss:$16 sps:$4 sm:$0xff]   ;;  %v5305_v43 = vld [vmem:[#allocation7 + $0x320] ss:$16 sps:$4 sm:$0xff]  }
  0x9a   :  { %1535 = vmatprep.subr.bf16.mxu0 %v5219_v44  ;;  %1699 = vmatprep.subr.bf16.mxu1 %v5221_v45  ;;  %v5308_v44 = vld [vmem:[#allocation7 + $0x328] ss:$16 sps:$4 sm:$0xff]   ;;  %v5313_v45 = vld [vmem:[#allocation7 + $0x344] ss:$16 sps:$4 sm:$0xff]  }
  0x9d   :  { %1536 = vmatpush1.bf16.msra.mxu0 %v5223_v47  ;;  %1700 = vmatpush1.bf16.msra.mxu1 %v5224_v49  ;;  %v5311_v47 = vld [vmem:[#allocation7 + $0x340] ss:$16 sps:$4 sm:$0xff]   ;;  %v5319_v49 = vld [vmem:[#allocation7 + $0x364] ss:$16 sps:$4 sm:$0xff]  }
  0x9e   :  { %1537 = vmatprep.subr.bf16.mxu0 %v5225_v50  ;;  %1701 = vmatprep.subr.bf16.mxu1 %v5227_v51  ;;  %v5322_v50 = vld [vmem:[#allocation7 + $0x36c] ss:$16 sps:$4 sm:$0xff]   ;;  %v5317_v51 = vld [vmem:[#allocation7 + $0x360] ss:$16 sps:$4 sm:$0xff]  }
  0xa1   :  { %1538 = vmatpush1.bf16.msra.mxu0 %v5229_v52  ;;  %1702 = vmatpush1.bf16.msra.mxu1 %v5230_v53  ;;  %v5320_v52 = vld [vmem:[#allocation7 + $0x368] ss:$16 sps:$4 sm:$0xff]   ;;  %v5325_v53 = vld [vmem:[#allocation7 + $0x384] ss:$16 sps:$4 sm:$0xff]  }
  0xa2   :  { %1539 = vmatprep.subr.bf16.mxu0 %v5231_v54  ;;  %1703 = vmatprep.subr.bf16.mxu1 %v5233_v55  ;;  %v5328_v54 = vld [vmem:[#allocation7 + $0x38c] ss:$16 sps:$4 sm:$0xff]   ;;  %v5323_v55 = vld [vmem:[#allocation7 + $0x380] ss:$16 sps:$4 sm:$0xff]  }
  0xa5   :  { %1540 = vmatpush1.bf16.msra.mxu0 %v5235_v56  ;;  %1704 = vmatpush1.bf16.msra.mxu1 %v5236_v57  ;;  %v5326_v56 = vld [vmem:[#allocation7 + $0x388] ss:$16 sps:$4 sm:$0xff]   ;;  %v5331_v57 = vld [vmem:[#allocation7 + $0x3a4] ss:$16 sps:$4 sm:$0xff]  }
  0xa6   :  { %1541 = vmatprep.subr.bf16.mxu0 %v5237_v58  ;;  %1705 = vmatprep.subr.bf16.mxu1 %v5239_v59  ;;  %v5334_v58 = vld [vmem:[#allocation7 + $0x3ac] ss:$16 sps:$4 sm:$0xff]   ;;  %v5329_v59 = vld [vmem:[#allocation7 + $0x3a0] ss:$16 sps:$4 sm:$0xff]  }
  0xa9   :  { %1542 = vmatpush1.bf16.msra.mxu0 %v5241_v60  ;;  %1706 = vmatpush1.bf16.msra.mxu1 %v5242_v61  ;;  %v5332_v60 = vld [vmem:[#allocation7 + $0x3a8] ss:$16 sps:$4 sm:$0xff]   ;;  %v5337_v61 = vld [vmem:[#allocation7 + $0x3c4] ss:$16 sps:$4 sm:$0xff]  }
  0xaa   :  { %1543 = vmatprep.subr.bf16.mxu0 %v5243_v62  ;;  %1707 = vmatprep.subr.bf16.mxu1 %v5245_v63  ;;  %v5340_v62 = vld [vmem:[#allocation7 + $0x3cc] ss:$16 sps:$4 sm:$0xff]   ;;  %v5335_v63 = vld [vmem:[#allocation7 + $0x3c0] ss:$16 sps:$4 sm:$0xff]  }
  0xad   :  { %1544 = vmatpush1.bf16.msra.mxu0 %v5247_v0  ;;  %1708 = vmatpush1.bf16.msra.mxu1 %v5248_v1  ;;  %v5338_v0 = vld [vmem:[#allocation7 + $0x3c8] ss:$16 sps:$4 sm:$0xff]   ;;  %v5343_v1 = vld [vmem:[#allocation7 + $0x3e4] ss:$16 sps:$4 sm:$0xff]  }
  0xae   :  { %1554 = vmatprep.subr.bf16.mxu0 %v5253_v2  ;;  %1718 = vmatprep.subr.bf16.mxu1 %v5256_v3  ;;  %v5346_v2 = vld [vmem:[#allocation7 + $0x3ec] ss:$16 sps:$4 sm:$0xff]   ;;  %v5341_v3 = vld [vmem:[#allocation7 + $0x3e0] ss:$16 sps:$4 sm:$0xff]  }
  0xb0   :  { %1546 = vmatmul.mubr.bf16.vlgmr.msra.gmra.mrb[0].mxu0 %v4483_v4  ;;  %1710 = vmatmul.mubr.bf16.vlgmr.msra.gmra.mrb[0].mxu1 %v4483_v4  ;;  %v5344_v4 = vld [vmem:[#allocation7 + $0x3e8] ss:$16 sps:$4 sm:$0xff]  }
  0xb1   :  { %1555 = vmatpush1.bf16.msra.mxu0 %v5251_v5  ;;  %1719 = vmatpush1.bf16.msra.mxu1 %v5254_v6  ;;  %v5351_v5 = vld [vmem:[#allocation7 + $0x404] ss:$16 sps:$4 sm:$0xff]   ;;  %v5354_v6 = vld [vmem:[#allocation7 + $0x40c] ss:$16 sps:$4 sm:$0xff]  }
  0xb2   :  { %1556 = vmatprep.subr.bf16.mxu0 %v5259_v7  ;;  %1720 = vmatprep.subr.bf16.mxu1 %v5262_v8  ;;  %v4485_v7 = vcombine.low %v6332_v29, %v6332_v29  ;;  %v5349_v8 = vld [vmem:[#allocation7 + $0x400] ss:$16 sps:$4 sm:$0xff]   ;;  %v5384_v29 = vld [vmem:[#allocation7 + $0x4ac] ss:$16 sps:$4 sm:$0xff]  }
  0xb3   :  { %1586 = vmatprep.mubr.bf16.mxu0 %v4486_v30  ;;  %1750 = vmatprep.mubr.bf16.mxu1 %v4486_v30  ;;  %v5379_v30 = vld [vmem:[#allocation7 + $0x4a0] ss:$16 sps:$4 sm:$0xff]  }
  0xb5   :  { %1557 = vmatpush1.bf16.msra.mxu0 %v5257_v9  ;;  %1721 = vmatpush1.bf16.msra.mxu1 %v5260_v10  ;;  %v5352_v9 = vld [vmem:[#allocation7 + $0x408] ss:$16 sps:$4 sm:$0xff]   ;;  %v5357_v10 = vld [vmem:[#allocation7 + $0x424] ss:$16 sps:$4 sm:$0xff]  }
  0xb6   :  { %1558 = vmatprep.subr.bf16.mxu0 %v5265_v11  ;;  %1722 = vmatprep.subr.bf16.mxu1 %v5268_v12  ;;  %v6338_v11 = vld [vmem:[#allocation2 + $0x10] sm:$0xff] }
  0xb7   :  { %v5360_v12 = vld [vmem:[#allocation7 + $0x42c] ss:$16 sps:$4 sm:$0xff]  }
  0xb9   :  { %1559 = vmatpush1.bf16.msra.mxu0 %v5263_v13  ;;  %1723 = vmatpush1.bf16.msra.mxu1 %v5266_v14  ;;  %v4488_v13 = vcombine.high %v6338_v11, %v6338_v11  ;;  %v5355_v14 = vld [vmem:[#allocation7 + $0x420] ss:$16 sps:$4 sm:$0xff]  }
  0xba   :  { %1560 = vmatprep.subr.bf16.mxu0 %v5271_v15  ;;  %1724 = vmatprep.subr.bf16.mxu1 %v5274_v16  ;;  %v5358_v15 = vld [vmem:[#allocation7 + $0x428] ss:$16 sps:$4 sm:$0xff]   ;;  %v5363_v16 = vld [vmem:[#allocation7 + $0x444] ss:$16 sps:$4 sm:$0xff]  }
  0xbd   :  { %1561 = vmatpush1.bf16.msra.mxu0 %v5269_v17  ;;  %1725 = vmatpush1.bf16.msra.mxu1 %v5272_v18  ;;  %v5366_v17 = vld [vmem:[#allocation7 + $0x44c] ss:$16 sps:$4 sm:$0xff]   ;;  %v5361_v18 = vld [vmem:[#allocation7 + $0x440] ss:$16 sps:$4 sm:$0xff]  }
  0xbe   :  { %1562 = vmatprep.subr.bf16.mxu0 %v5277_v19  ;;  %1726 = vmatprep.subr.bf16.mxu1 %v5280_v20  ;;  %v5364_v19 = vld [vmem:[#allocation7 + $0x448] ss:$16 sps:$4 sm:$0xff]   ;;  %v5369_v20 = vld [vmem:[#allocation7 + $0x464] ss:$16 sps:$4 sm:$0xff]  }
  0xc1   :  { %1563 = vmatpush1.bf16.msra.mxu0 %v5275_v21  ;;  %1727 = vmatpush1.bf16.msra.mxu1 %v5278_v22  ;;  %v5372_v21 = vld [vmem:[#allocation7 + $0x46c] ss:$16 sps:$4 sm:$0xff]   ;;  %v5367_v22 = vld [vmem:[#allocation7 + $0x460] ss:$16 sps:$4 sm:$0xff]  }
  0xc2   :  { %1564 = vmatprep.subr.bf16.mxu0 %v5283_v23  ;;  %1728 = vmatprep.subr.bf16.mxu1 %v5286_v24  ;;  %v5370_v23 = vld [vmem:[#allocation7 + $0x468] ss:$16 sps:$4 sm:$0xff]   ;;  %v5375_v24 = vld [vmem:[#allocation7 + $0x484] ss:$16 sps:$4 sm:$0xff]  }
  0xc5   :  { %1565 = vmatpush1.bf16.msra.mxu0 %v5281_v25  ;;  %1729 = vmatpush1.bf16.msra.mxu1 %v5284_v26  ;;  %v5378_v25 = vld [vmem:[#allocation7 + $0x48c] ss:$16 sps:$4 sm:$0xff]   ;;  %v5373_v26 = vld [vmem:[#allocation7 + $0x480] ss:$16 sps:$4 sm:$0xff]  }
  0xc6   :  { %1566 = vmatprep.subr.bf16.mxu0 %v5289_v27  ;;  %1730 = vmatprep.subr.bf16.mxu1 %v5292_v28  ;;  %v5376_v27 = vld [vmem:[#allocation7 + $0x488] ss:$16 sps:$4 sm:$0xff]   ;;  %v5381_v28 = vld [vmem:[#allocation7 + $0x4a4] ss:$16 sps:$4 sm:$0xff]  }
  0xc9   :  { %1567 = vmatpush1.bf16.msra.mxu0 %v5287_v31  ;;  %1731 = vmatpush1.bf16.msra.mxu1 %v5290_v32  ;;  %v5382_v31 = vld [vmem:[#allocation7 + $0x4a8] ss:$16 sps:$4 sm:$0xff]   ;;  %v5387_v32 = vld [vmem:[#allocation7 + $0x4c4] ss:$16 sps:$4 sm:$0xff]  }
  0xca   :  { %1568 = vmatprep.subr.bf16.mxu0 %v5295_v33  ;;  %1732 = vmatprep.subr.bf16.mxu1 %v5298_v34  ;;  %v5390_v33 = vld [vmem:[#allocation7 + $0x4cc] ss:$16 sps:$4 sm:$0xff]   ;;  %v5385_v34 = vld [vmem:[#allocation7 + $0x4c0] ss:$16 sps:$4 sm:$0xff]  }
  0xcd   :  { %1569 = vmatpush1.bf16.msra.mxu0 %v5293_v35  ;;  %1733 = vmatpush1.bf16.msra.mxu1 %v5296_v36  ;;  %v5388_v35 = vld [vmem:[#allocation7 + $0x4c8] ss:$16 sps:$4 sm:$0xff]   ;;  %v5393_v36 = vld [vmem:[#allocation7 + $0x4e4] ss:$16 sps:$4 sm:$0xff]  }
  0xce   :  { %1570 = vmatprep.subr.bf16.mxu0 %v5301_v37  ;;  %1734 = vmatprep.subr.bf16.mxu1 %v5304_v38  ;;  %v5396_v37 = vld [vmem:[#allocation7 + $0x4ec] ss:$16 sps:$4 sm:$0xff]   ;;  %v5391_v38 = vld [vmem:[#allocation7 + $0x4e0] ss:$16 sps:$4 sm:$0xff]  }
  0xd1   :  { %1571 = vmatpush1.bf16.msra.mxu0 %v5299_v39  ;;  %1735 = vmatpush1.bf16.msra.mxu1 %v5302_v40  ;;  %v5394_v39 = vld [vmem:[#allocation7 + $0x4e8] ss:$16 sps:$4 sm:$0xff]   ;;  %v5399_v40 = vld [vmem:[#allocation7 + $0x504] ss:$16 sps:$4 sm:$0xff]  }
  0xd2   :  { %1572 = vmatprep.subr.bf16.mxu0 %v5307_v41  ;;  %1736 = vmatprep.subr.bf16.mxu1 %v5310_v42  ;;  %v5402_v41 = vld [vmem:[#allocation7 + $0x50c] ss:$16 sps:$4 sm:$0xff]   ;;  %v5397_v42 = vld [vmem:[#allocation7 + $0x500] ss:$16 sps:$4 sm:$0xff]  }
  0xd5   :  { %1573 = vmatpush1.bf16.msra.mxu0 %v5305_v43  ;;  %1737 = vmatpush1.bf16.msra.mxu1 %v5308_v44  ;;  %v5400_v43 = vld [vmem:[#allocation7 + $0x508] ss:$16 sps:$4 sm:$0xff]   ;;  %v5405_v44 = vld [vmem:[#allocation7 + $0x524] ss:$16 sps:$4 sm:$0xff]  }
  0xd6   :  { %1574 = vmatprep.subr.bf16.mxu0 %v5313_v45  ;;  %1738 = vmatprep.subr.bf16.mxu1 %v5316_v46  ;;  %v5408_v45 = vld [vmem:[#allocation7 + $0x52c] ss:$16 sps:$4 sm:$0xff]   ;;  %v5403_v46 = vld [vmem:[#allocation7 + $0x520] ss:$16 sps:$4 sm:$0xff]  }
  0xd9   :  { %1575 = vmatpush1.bf16.msra.mxu0 %v5311_v47  ;;  %1739 = vmatpush1.bf16.msra.mxu1 %v5314_v48  ;;  %v5406_v47 = vld [vmem:[#allocation7 + $0x528] ss:$16 sps:$4 sm:$0xff]   ;;  %v5411_v48 = vld [vmem:[#allocation7 + $0x544] ss:$16 sps:$4 sm:$0xff]  }
  0xda   :  { %1576 = vmatprep.subr.bf16.mxu0 %v5319_v49  ;;  %1740 = vmatprep.subr.bf16.mxu1 %v5322_v50  ;;  %v5414_v49 = vld [vmem:[#allocation7 + $0x54c] ss:$16 sps:$4 sm:$0xff]   ;;  %v5409_v50 = vld [vmem:[#allocation7 + $0x540] ss:$16 sps:$4 sm:$0xff]  }
  0xdd   :  { %1577 = vmatpush1.bf16.msra.mxu0 %v5317_v51  ;;  %1741 = vmatpush1.bf16.msra.mxu1 %v5320_v52  ;;  %v5412_v51 = vld [vmem:[#allocation7 + $0x548] ss:$16 sps:$4 sm:$0xff]   ;;  %v5417_v52 = vld [vmem:[#allocation7 + $0x564] ss:$16 sps:$4 sm:$0xff]  }
  0xde   :  { %1578 = vmatprep.subr.bf16.mxu0 %v5325_v53  ;;  %1742 = vmatprep.subr.bf16.mxu1 %v5328_v54  ;;  %v5420_v53 = vld [vmem:[#allocation7 + $0x56c] ss:$16 sps:$4 sm:$0xff]   ;;  %v5415_v54 = vld [vmem:[#allocation7 + $0x560] ss:$16 sps:$4 sm:$0xff]  }
  0xe1   :  { %1579 = vmatpush1.bf16.msra.mxu0 %v5323_v55  ;;  %1743 = vmatpush1.bf16.msra.mxu1 %v5326_v56  ;;  %v5418_v55 = vld [vmem:[#allocation7 + $0x568] ss:$16 sps:$4 sm:$0xff]   ;;  %v5423_v56 = vld [vmem:[#allocation7 + $0x584] ss:$16 sps:$4 sm:$0xff]  }
  0xe2   :  { %1580 = vmatprep.subr.bf16.mxu0 %v5331_v57  ;;  %1744 = vmatprep.subr.bf16.mxu1 %v5334_v58  ;;  %v5426_v57 = vld [vmem:[#allocation7 + $0x58c] ss:$16 sps:$4 sm:$0xff]   ;;  %v5421_v58 = vld [vmem:[#allocation7 + $0x580] ss:$16 sps:$4 sm:$0xff]  }
  0xe5   :  { %1581 = vmatpush1.bf16.msra.mxu0 %v5329_v59  ;;  %1745 = vmatpush1.bf16.msra.mxu1 %v5332_v60  ;;  %v5424_v59 = vld [vmem:[#allocation7 + $0x588] ss:$16 sps:$4 sm:$0xff]   ;;  %v5429_v60 = vld [vmem:[#allocation7 + $0x5a4] ss:$16 sps:$4 sm:$0xff]  }
  0xe6   :  { %1582 = vmatprep.subr.bf16.mxu0 %v5337_v61  ;;  %1746 = vmatprep.subr.bf16.mxu1 %v5340_v62  ;;  %v5432_v61 = vld [vmem:[#allocation7 + $0x5ac] ss:$16 sps:$4 sm:$0xff]   ;;  %v5427_v62 = vld [vmem:[#allocation7 + $0x5a0] ss:$16 sps:$4 sm:$0xff]  }
  0xe9   :  { %1583 = vmatpush1.bf16.msra.mxu0 %v5335_v63  ;;  %1747 = vmatpush1.bf16.msra.mxu1 %v5338_v0  ;;  %v5430_v63 = vld [vmem:[#allocation7 + $0x5a8] ss:$16 sps:$4 sm:$0xff]   ;;  %v5435_v0 = vld [vmem:[#allocation7 + $0x5c4] ss:$16 sps:$4 sm:$0xff]  }
  0xea   :  { %1584 = vmatprep.subr.bf16.mxu0 %v5343_v1  ;;  %1748 = vmatprep.subr.bf16.mxu1 %v5346_v2  ;;  %v5438_v1 = vld [vmem:[#allocation7 + $0x5cc] ss:$16 sps:$4 sm:$0xff]   ;;  %v5433_v2 = vld [vmem:[#allocation7 + $0x5c0] ss:$16 sps:$4 sm:$0xff]  }
  0xed   :  { %1585 = vmatpush1.bf16.msra.mxu0 %v5341_v3  ;;  %1749 = vmatpush1.bf16.msra.mxu1 %v5344_v4  ;;  %v5436_v3 = vld [vmem:[#allocation7 + $0x5c8] ss:$16 sps:$4 sm:$0xff]   ;;  %v5441_v4 = vld [vmem:[#allocation7 + $0x5e4] ss:$16 sps:$4 sm:$0xff]  }
  0xee   :  { %1595 = vmatprep.subr.bf16.mxu0 %v5351_v5  ;;  %1759 = vmatprep.subr.bf16.mxu1 %v5354_v6  ;;  %v5444_v5 = vld [vmem:[#allocation7 + $0x5ec] ss:$16 sps:$4 sm:$0xff]   ;;  %v5439_v6 = vld [vmem:[#allocation7 + $0x5e0] ss:$16 sps:$4 sm:$0xff]  }
  0xf0   :  { %1587 = vmatmul.mubr.bf16.vlgmr.msra.gmra.mrb[0].mxu0 %v4485_v7  ;;  %1751 = vmatmul.mubr.bf16.vlgmr.msra.gmra.mrb[0].mxu1 %v4485_v7  ;;  %v5442_v7 = vld [vmem:[#allocation7 + $0x5e8] ss:$16 sps:$4 sm:$0xff]  }
  0xf1   :  { %1596 = vmatpush1.bf16.msra.mxu0 %v5349_v8  ;;  %1760 = vmatpush1.bf16.msra.mxu1 %v5352_v9  ;;  %v5449_v8 = vld [vmem:[#allocation7 + $0x604] ss:$16 sps:$4 sm:$0xff]   ;;  %v5452_v9 = vld [vmem:[#allocation7 + $0x60c] ss:$16 sps:$4 sm:$0xff]  }
  0xf2   :  { %1597 = vmatprep.subr.bf16.mxu0 %v5357_v10  ;;  %1761 = vmatprep.subr.bf16.mxu1 %v5360_v12  ;;  %v5447_v10 = vld [vmem:[#allocation7 + $0x600] ss:$16 sps:$4 sm:$0xff]   ;;  %v5450_v12 = vld [vmem:[#allocation7 + $0x608] ss:$16 sps:$4 sm:$0xff]  }
  0xf3   :  { %1627 = vmatprep.mubr.bf16.mxu0 %v4488_v13  ;;  %1791 = vmatprep.mubr.bf16.mxu1 %v4488_v13  ;;  %v4487_v13 = vcombine.low %v6338_v11, %v6338_v11  ;;  %v5467_v11 = vld [vmem:[#allocation7 + $0x664] ss:$16 sps:$4 sm:$0xff]  }
  0xf5   :  { %1598 = vmatpush1.bf16.msra.mxu0 %v5355_v14  ;;  %1762 = vmatpush1.bf16.msra.mxu1 %v5358_v15  ;;  %v5455_v14 = vld [vmem:[#allocation7 + $0x624] ss:$16 sps:$4 sm:$0xff]   ;;  %v5458_v15 = vld [vmem:[#allocation7 + $0x62c] ss:$16 sps:$4 sm:$0xff]  }
  0xf6   :  { %1599 = vmatprep.subr.bf16.mxu0 %v5363_v16  ;;  %1763 = vmatprep.subr.bf16.mxu1 %v5366_v17  ;;  %v5453_v16 = vld [vmem:[#allocation7 + $0x620] ss:$16 sps:$4 sm:$0xff]   ;;  %v5456_v17 = vld [vmem:[#allocation7 + $0x628] ss:$16 sps:$4 sm:$0xff]  }
  0xf9   :  { %1600 = vmatpush1.bf16.msra.mxu0 %v5361_v18  ;;  %1764 = vmatpush1.bf16.msra.mxu1 %v5364_v19  ;;  %v5461_v18 = vld [vmem:[#allocation7 + $0x644] ss:$16 sps:$4 sm:$0xff]   ;;  %v5464_v19 = vld [vmem:[#allocation7 + $0x64c] ss:$16 sps:$4 sm:$0xff]  }
  0xfa   :  { %1601 = vmatprep.subr.bf16.mxu0 %v5369_v20  ;;  %1765 = vmatprep.subr.bf16.mxu1 %v5372_v21  ;;  %v5459_v20 = vld [vmem:[#allocation7 + $0x640] ss:$16 sps:$4 sm:$0xff]   ;;  %v5462_v21 = vld [vmem:[#allocation7 + $0x648] ss:$16 sps:$4 sm:$0xff]  }
  0xfd   :  { %1602 = vmatpush1.bf16.msra.mxu0 %v5367_v22  ;;  %1766 = vmatpush1.bf16.msra.mxu1 %v5370_v23  ;;  %v6176_v22 = vmov 0   ;;  %v5470_v23 = vld [vmem:[#allocation7 + $0x66c] ss:$16 sps:$4 sm:$0xff]  }
  0xfe   :  { %1603 = vmatprep.subr.bf16.mxu0 %v5375_v24  ;;  %1767 = vmatprep.subr.bf16.mxu1 %v5378_v25  ;;  %v5465_v24 = vld [vmem:[#allocation7 + $0x660] ss:$16 sps:$4 sm:$0xff]   ;;  %v5468_v25 = vld [vmem:[#allocation7 + $0x668] ss:$16 sps:$4 sm:$0xff]  }
 0x101   :  { %1604 = vmatpush1.bf16.msra.mxu0 %v5373_v26  ;;  %1768 = vmatpush1.bf16.msra.mxu1 %v5376_v27  ;;  %v5473_v26 = vld [vmem:[#allocation7 + $0x684] ss:$16 sps:$4 sm:$0xff]   ;;  %v5476_v27 = vld [vmem:[#allocation7 + $0x68c] ss:$16 sps:$4 sm:$0xff]  }
 0x102   :  { %1605 = vmatprep.subr.bf16.mxu0 %v5381_v28  ;;  %1769 = vmatprep.subr.bf16.mxu1 %v5384_v29  ;;  %v5471_v28 = vld [vmem:[#allocation7 + $0x680] ss:$16 sps:$4 sm:$0xff]   ;;  %v5474_v29 = vld [vmem:[#allocation7 + $0x688] ss:$16 sps:$4 sm:$0xff]  }
 0x105   :  { %1606 = vmatpush1.bf16.msra.mxu0 %v5379_v30  ;;  %1770 = vmatpush1.bf16.msra.mxu1 %v5382_v31  ;;  %v5479_v30 = vld [vmem:[#allocation7 + $0x6a4] ss:$16 sps:$4 sm:$0xff]   ;;  %v5482_v31 = vld [vmem:[#allocation7 + $0x6ac] ss:$16 sps:$4 sm:$0xff]  }
 0x106   :  { %1607 = vmatprep.subr.bf16.mxu0 %v5387_v32  ;;  %1771 = vmatprep.subr.bf16.mxu1 %v5390_v33  ;;  %v5477_v32 = vld [vmem:[#allocation7 + $0x6a0] ss:$16 sps:$4 sm:$0xff]   ;;  %v5480_v33 = vld [vmem:[#allocation7 + $0x6a8] ss:$16 sps:$4 sm:$0xff]  }
 0x109   :  { %1608 = vmatpush1.bf16.msra.mxu0 %v5385_v34  ;;  %1772 = vmatpush1.bf16.msra.mxu1 %v5388_v35  ;;  %v5485_v34 = vld [vmem:[#allocation7 + $0x6c4] ss:$16 sps:$4 sm:$0xff]   ;;  %v5488_v35 = vld [vmem:[#allocation7 + $0x6cc] ss:$16 sps:$4 sm:$0xff]  }
 0x10a   :  { %1609 = vmatprep.subr.bf16.mxu0 %v5393_v36  ;;  %1773 = vmatprep.subr.bf16.mxu1 %v5396_v37  ;;  %v5483_v36 = vld [vmem:[#allocation7 + $0x6c0] ss:$16 sps:$4 sm:$0xff]   ;;  %v5486_v37 = vld [vmem:[#allocation7 + $0x6c8] ss:$16 sps:$4 sm:$0xff]  }
 0x10d   :  { %1610 = vmatpush1.bf16.msra.mxu0 %v5391_v38  ;;  %1774 = vmatpush1.bf16.msra.mxu1 %v5394_v39  ;;  %v5491_v38 = vld [vmem:[#allocation7 + $0x6e4] ss:$16 sps:$4 sm:$0xff]   ;;  %v5494_v39 = vld [vmem:[#allocation7 + $0x6ec] ss:$16 sps:$4 sm:$0xff]  }
 0x10e   :  { %1611 = vmatprep.subr.bf16.mxu0 %v5399_v40  ;;  %1775 = vmatprep.subr.bf16.mxu1 %v5402_v41  ;;  %v5489_v40 = vld [vmem:[#allocation7 + $0x6e0] ss:$16 sps:$4 sm:$0xff]   ;;  %v5492_v41 = vld [vmem:[#allocation7 + $0x6e8] ss:$16 sps:$4 sm:$0xff]  }
 0x111   :  { %1612 = vmatpush1.bf16.msra.mxu0 %v5397_v42  ;;  %1776 = vmatpush1.bf16.msra.mxu1 %v5400_v43  ;;  %v5498_v42 = vld [vmem:[#allocation8 + $0x4] ss:$8 sps:$4 sm:$0xff]   ;;  %v5495_v43 = vld [vmem:[#allocation2 + $0x18] ss:$0 sps:$4 sm:$0xff]  }
 0x112   :  { %1613 = vmatprep.subr.bf16.mxu0 %v5405_v44  ;;  %1777 = vmatprep.subr.bf16.mxu1 %v5408_v45  ;;  %v5496_v44 = vld [vmem:[#allocation8] ss:$8 sps:$4 sm:$0xff]   ;;  %v5501_v45 = vld [vmem:[#allocation8 + $0x14] ss:$8 sps:$4 sm:$0xff]  }
 0x115   :  { %1614 = vmatpush1.bf16.msra.mxu0 %v5403_v46  ;;  %1778 = vmatpush1.bf16.msra.mxu1 %v5406_v47  ;;  %v5499_v46 = vld [vmem:[#allocation8 + $0x10] ss:$8 sps:$4 sm:$0xff]   ;;  %v5504_v47 = vld [vmem:[#allocation8 + $0x24] ss:$8 sps:$4 sm:$0xff]  }
 0x116   :  { %1615 = vmatprep.subr.bf16.mxu0 %v5411_v48  ;;  %1779 = vmatprep.subr.bf16.mxu1 %v5414_v49  ;;  %v5502_v48 = vld [vmem:[#allocation8 + $0x20] ss:$8 sps:$4 sm:$0xff]   ;;  %v5507_v49 = vld [vmem:[#allocation8 + $0x34] ss:$8 sps:$4 sm:$0xff]  }
 0x119   :  { %1616 = vmatpush1.bf16.msra.mxu0 %v5409_v50  ;;  %1780 = vmatpush1.bf16.msra.mxu1 %v5412_v51  ;;  %v5505_v50 = vld [vmem:[#allocation8 + $0x30] ss:$8 sps:$4 sm:$0xff]   ;;  %v5510_v51 = vld [vmem:[#allocation8 + $0x44] ss:$8 sps:$4 sm:$0xff]  }
 0x11a   :  { %1617 = vmatprep.subr.bf16.mxu0 %v5417_v52  ;;  %1781 = vmatprep.subr.bf16.mxu1 %v5420_v53  ;;  %v5508_v52 = vld [vmem:[#allocation8 + $0x40] ss:$8 sps:$4 sm:$0xff]   ;;  %v5513_v53 = vld [vmem:[#allocation8 + $0x54] ss:$8 sps:$4 sm:$0xff]  }
 0x11d   :  { %1618 = vmatpush1.bf16.msra.mxu0 %v5415_v54  ;;  %1782 = vmatpush1.bf16.msra.mxu1 %v5418_v55  ;;  %v5511_v54 = vld [vmem:[#allocation8 + $0x50] ss:$8 sps:$4 sm:$0xff]   ;;  %v5516_v55 = vld [vmem:[#allocation8 + $0x64] ss:$8 sps:$4 sm:$0xff]  }
 0x11e   :  { %1619 = vmatprep.subr.bf16.mxu0 %v5423_v56  ;;  %1783 = vmatprep.subr.bf16.mxu1 %v5426_v57  ;;  %v5514_v56 = vld [vmem:[#allocation8 + $0x60] ss:$8 sps:$4 sm:$0xff]   ;;  %v5519_v57 = vld [vmem:[#allocation8 + $0x74] ss:$8 sps:$4 sm:$0xff]  }
 0x121   :  { %1620 = vmatpush1.bf16.msra.mxu0 %v5421_v58  ;;  %1784 = vmatpush1.bf16.msra.mxu1 %v5424_v59  ;;  %v5517_v58 = vld [vmem:[#allocation8 + $0x70] ss:$8 sps:$4 sm:$0xff]   ;;  %v5522_v59 = vld [vmem:[#allocation8 + $0x84] ss:$8 sps:$4 sm:$0xff]  }
 0x122   :  { %1621 = vmatprep.subr.bf16.mxu0 %v5429_v60  ;;  %1785 = vmatprep.subr.bf16.mxu1 %v5432_v61  ;;  %v5520_v60 = vld [vmem:[#allocation8 + $0x80] ss:$8 sps:$4 sm:$0xff]   ;;  %v5525_v61 = vld [vmem:[#allocation8 + $0x94] ss:$8 sps:$4 sm:$0xff]  }
 0x125   :  { %1622 = vmatpush1.bf16.msra.mxu0 %v5427_v62  ;;  %1786 = vmatpush1.bf16.msra.mxu1 %v5430_v63  ;;  %v5523_v62 = vld [vmem:[#allocation8 + $0x90] ss:$8 sps:$4 sm:$0xff]   ;;  %v5528_v63 = vld [vmem:[#allocation8 + $0xa4] ss:$8 sps:$4 sm:$0xff]  }
 0x126   :  { %1623 = vmatprep.subr.bf16.mxu0 %v5435_v0  ;;  %1787 = vmatprep.subr.bf16.mxu1 %v5438_v1  ;;  %v5526_v0 = vld [vmem:[#allocation8 + $0xa0] ss:$8 sps:$4 sm:$0xff]   ;;  %v5531_v1 = vld [vmem:[#allocation8 + $0xb4] ss:$8 sps:$4 sm:$0xff]  }
 0x129   :  { %1624 = vmatpush1.bf16.msra.mxu0 %v5433_v2  ;;  %1788 = vmatpush1.bf16.msra.mxu1 %v5436_v3  ;;  %v5529_v2 = vld [vmem:[#allocation8 + $0xb0] ss:$8 sps:$4 sm:$0xff]   ;;  %v5534_v3 = vld [vmem:[#allocation8 + $0xc4] ss:$8 sps:$4 sm:$0xff]  }
 0x12a   :  { %1625 = vmatprep.subr.bf16.mxu0 %v5441_v4  ;;  %1789 = vmatprep.subr.bf16.mxu1 %v5444_v5  ;;  %v5532_v4 = vld [vmem:[#allocation8 + $0xc0] ss:$8 sps:$4 sm:$0xff]   ;;  %v5537_v5 = vld [vmem:[#allocation8 + $0xd4] ss:$8 sps:$4 sm:$0xff]  }
 0x12d   :  { %1626 = vmatpush1.bf16.msra.mxu0 %v5439_v6  ;;  %1790 = vmatpush1.bf16.msra.mxu1 %v5442_v7  ;;  %v5535_v6 = vld [vmem:[#allocation8 + $0xd0] ss:$8 sps:$4 sm:$0xff]   ;;  %v5540_v7 = vld [vmem:[#allocation8 + $0xe4] ss:$8 sps:$4 sm:$0xff]  }
 0x12e   :  { %1636 = vmatprep.subr.bf16.mxu0 %v5449_v8  ;;  %1800 = vmatprep.subr.bf16.mxu1 %v5452_v9  ;;  %v5538_v8 = vld [vmem:[#allocation8 + $0xe0] ss:$8 sps:$4 sm:$0xff]   ;;  %v5543_v9 = vld [vmem:[#allocation8 + $0xf4] ss:$8 sps:$4 sm:$0xff]  }
 0x130   :  { %1628 = vmatmul.mubr.bf16.vlgmr.msra.gmra.mrb[0].mxu0 %v4487_v13  ;;  %1792 = vmatmul.mubr.bf16.vlgmr.msra.gmra.mrb[0].mxu1 %v4487_v13  ;;  %v5592_v13 = vld [vmem:[#allocation10] ss:$16 sps:$4 sm:$0xff]  }
 0x131   :  { %1637 = vmatpush1.bf16.msra.mxu0 %v5447_v10  ;;  %1801 = vmatpush1.bf16.msra.mxu1 %v5450_v12  ;;  %v5541_v10 = vld [vmem:[#allocation8 + $0xf0] ss:$8 sps:$4 sm:$0xff]   ;;  %v5546_v12 = vld [vmem:[#allocation8 + $0x104] ss:$8 sps:$4 sm:$0xff]  }
 0x132   :  { %1638 = vmatprep.subr.bf16.mxu0 %v5455_v14  ;;  %1802 = vmatprep.subr.bf16.mxu1 %v5458_v15  ;;  %v5594_v14 = vld [vmem:[#allocation10 + $0x4] ss:$16 sps:$4 sm:$0xff]  }
 0x133   :  { %1668 = vmatprep.mubr.bf16.mxu0 %v6176_v22  ;;  %1832 = vmatprep.mubr.bf16.mxu1 %v6176_v22  ;;  %v5597_v15 = vld [vmem:[#allocation10 + $0x24] ss:$16 sps:$4 sm:$0xff]  }
 0x135   :  { %1639 = vmatpush1.bf16.msra.mxu0 %v5453_v16  ;;  %1803 = vmatpush1.bf16.msra.mxu1 %v5456_v17  ;;  %v5595_v16 = vld [vmem:[#allocation10 + $0x20] ss:$16 sps:$4 sm:$0xff]   ;;  %v348_v17 = vlaneseq }
 0x136   :  { %1640 = vmatprep.subr.bf16.mxu0 %v5461_v18  ;;  %1804 = vmatprep.subr.bf16.mxu1 %v5464_v19 }
 0x137   :  { %v6347_v18 = vshrl.u32 %v348_v17, 7  ;;  %v5598_v17 = vld [vmem:[#allocation10 + $0x40] ss:$16 sps:$4 sm:$0xff]  }
 0x139   :  { %1641 = vmatpush1.bf16.msra.mxu0 %v5459_v20  ;;  %1805 = vmatpush1.bf16.msra.mxu1 %v5462_v21  ;;  %v6350_v19 = vsub.s32 0, %v6347_v18  ;;  %v6355_v20 = vld [vmem:[%s6469_s3] sm:$0xf]  ;;  %v6358_v21 = vsub.s32 1, %v6347_v18 }
 0x13a   :  { %1642 = vmatprep.subr.bf16.mxu0 %v5467_v11  ;;  %1806 = vmatprep.subr.bf16.mxu1 %v5470_v23  ;;  %v6361_v11 = vsub.s32 3, %v6347_v18 }
 0x13b   :  { %v351_v23 = vrot.slane %v6355_v20, %v6350_v19 }
 0x13d   :  { %1643 = vmatpush1.bf16.msra.mxu0 %v5465_v24  ;;  %1807 = vmatpush1.bf16.msra.mxu1 %v5468_v25  ;;  %v355_v24 = vrot.slane %v6355_v20, %v6358_v21  ;;  %v363_v25 = vrot.slane %v6355_v20, %v6361_v11 }
 0x13e   :  { %1644 = vmatprep.subr.bf16.mxu0 %v5473_v26  ;;  %1808 = vmatprep.subr.bf16.mxu1 %v5476_v27 }
 0x141   :  { %1645 = vmatpush1.bf16.msra.mxu0 %v5471_v28  ;;  %1809 = vmatpush1.bf16.msra.mxu1 %v5474_v29 }
 0x142   :  { %1646 = vmatprep.subr.bf16.mxu0 %v5479_v30  ;;  %1810 = vmatprep.subr.bf16.mxu1 %v5482_v31 }
 0x145   :  { %1647 = vmatpush1.bf16.msra.mxu0 %v5477_v32  ;;  %1811 = vmatpush1.bf16.msra.mxu1 %v5480_v33 }
 0x146   :  { %1648 = vmatprep.subr.bf16.mxu0 %v5485_v34  ;;  %1812 = vmatprep.subr.bf16.mxu1 %v5488_v35 }
 0x149   :  { %1649 = vmatpush1.bf16.msra.mxu0 %v5483_v36  ;;  %1813 = vmatpush1.bf16.msra.mxu1 %v5486_v37 }
 0x14a   :  { %1650 = vmatprep.subr.bf16.mxu0 %v5491_v38  ;;  %1814 = vmatprep.subr.bf16.mxu1 %v5494_v39 }
 0x14d   :  { %1651 = vmatpush1.bf16.msra.mxu0 %v5489_v40  ;;  %1815 = vmatpush1.bf16.msra.mxu1 %v5492_v41  ;;  %v5544_v41 = vld [vmem:[#allocation8 + $0x100] ss:$8 sps:$4 sm:$0xff]  }
 0x14e   :  { %2245 = vmatprep.subr.bf16.mxu0 %v5498_v42  ;;  %2548 = vmatprep.subr.bf16.mxu1 %v5594_v14 }
 0x150   :  { %1669 = vmatmul.mubr.bf16.vlgmr.msra.gmra.mrb[0].mxu0 %v5495_v43  ;;  %1833 = vmatmul.mubr.bf16.vlgmr.msra.gmra.mrb[0].mxu1 %v5495_v43  ;;  %v5549_v43 = vld [vmem:[#allocation8 + $0x114] ss:$8 sps:$4 sm:$0xff]  }
 0x151   :  { %2246 = vmatpush1.bf16.msra.mxu0 %v5496_v44  ;;  %2580 = vmatprep.mubr.bf16.mxu1 %v6176_v22 }
 0x152   :  { %2247 = vmatprep.subr.bf16.mxu0 %v5501_v45  ;;  %2549 = vmatpush1.bf16.msra.mxu1 %v5592_v13  ;;  %v5547_v45 = vld [vmem:[#allocation8 + $0x110] ss:$8 sps:$4 sm:$0xff]  }
 0x153   :  { %2550 = vmatprep.subr.bf16.mxu1 %v5597_v15  ;;  %v5589_v13 = vld [vmem:[#allocation8 + $0x1f0] ss:$8 sps:$4 sm:$0xff]  }
 0x155   :  { %2248 = vmatpush1.bf16.msra.mxu0 %v5499_v46  ;;  %v5552_v46 = vld [vmem:[#allocation8 + $0x124] ss:$8 sps:$4 sm:$0xff]  }
 0x156   :  { %2249 = vmatprep.subr.bf16.mxu0 %v5504_v47  ;;  %2551 = vmatpush1.bf16.msra.mxu1 %v5595_v16  ;;  %v5550_v47 = vld [vmem:[#allocation8 + $0x120] ss:$8 sps:$4 sm:$0xff]   ;;  %v5600_v16 = vld [vmem:[#allocation10 + $0x44] ss:$16 sps:$4 sm:$0xff]  }
 0x157   :  { %2552 = vmatprep.subr.bf16.mxu1 %v5600_v16  ;;  %v5621_v16 = vld [vmem:[#allocation10 + $0x2c] ss:$16 sps:$4 sm:$0xff]  }
 0x159   :  { %2250 = vmatpush1.bf16.msra.mxu0 %v5502_v48  ;;  %v5555_v48 = vld [vmem:[#allocation8 + $0x134] ss:$8 sps:$4 sm:$0xff]  }
 0x15a   :  { %2251 = vmatprep.subr.bf16.mxu0 %v5507_v49  ;;  %v5553_v49 = vld [vmem:[#allocation8 + $0x130] ss:$8 sps:$4 sm:$0xff]   ;;  %2553 = vmatpush1.bf16.msra.mxu1 %v5598_v17 }
 0x15b   :  { %v5619_v17 = vld [vmem:[#allocation10 + $0x28] ss:$16 sps:$4 sm:$0xff]  }
 0x15d   :  { %2252 = vmatpush1.bf16.msra.mxu0 %v5505_v50  ;;  %v5558_v50 = vld [vmem:[#allocation8 + $0x144] ss:$8 sps:$4 sm:$0xff]  }
 0x15e   :  { %2253 = vmatprep.subr.bf16.mxu0 %v5510_v51  ;;  %v5556_v51 = vld [vmem:[#allocation8 + $0x140] ss:$8 sps:$4 sm:$0xff]  }
 0x161   :  { %2254 = vmatpush1.bf16.msra.mxu0 %v5508_v52  ;;  %v5561_v52 = vld [vmem:[#allocation8 + $0x154] ss:$8 sps:$4 sm:$0xff]  }
 0x162   :  { %2255 = vmatprep.subr.bf16.mxu0 %v5513_v53  ;;  %v5559_v53 = vld [vmem:[#allocation8 + $0x150] ss:$8 sps:$4 sm:$0xff]  }
 0x165   :  { %2256 = vmatpush1.bf16.msra.mxu0 %v5511_v54  ;;  %v5564_v54 = vld [vmem:[#allocation8 + $0x164] ss:$8 sps:$4 sm:$0xff]  }
 0x166   :  { %2257 = vmatprep.subr.bf16.mxu0 %v5516_v55  ;;  %v5562_v55 = vld [vmem:[#allocation8 + $0x160] ss:$8 sps:$4 sm:$0xff]  }
 0x169   :  { %2258 = vmatpush1.bf16.msra.mxu0 %v5514_v56  ;;  %v5567_v56 = vld [vmem:[#allocation8 + $0x174] ss:$8 sps:$4 sm:$0xff]  }
 0x16a   :  { %2259 = vmatprep.subr.bf16.mxu0 %v5519_v57  ;;  %v5565_v57 = vld [vmem:[#allocation8 + $0x170] ss:$8 sps:$4 sm:$0xff]  }
 0x16d   :  { %2260 = vmatpush1.bf16.msra.mxu0 %v5517_v58  ;;  %v5570_v58 = vld [vmem:[#allocation8 + $0x184] ss:$8 sps:$4 sm:$0xff]  }
 0x16e   :  { %2261 = vmatprep.subr.bf16.mxu0 %v5522_v59  ;;  %v5568_v59 = vld [vmem:[#allocation8 + $0x180] ss:$8 sps:$4 sm:$0xff]  }
 0x171   :  { %2262 = vmatpush1.bf16.msra.mxu0 %v5520_v60  ;;  %v5573_v60 = vld [vmem:[#allocation8 + $0x194] ss:$8 sps:$4 sm:$0xff]  }
 0x172   :  { %2263 = vmatprep.subr.bf16.mxu0 %v5525_v61  ;;  %v5571_v61 = vld [vmem:[#allocation8 + $0x190] ss:$8 sps:$4 sm:$0xff]  }
 0x175   :  { %2264 = vmatpush1.bf16.msra.mxu0 %v5523_v62  ;;  %v5576_v62 = vld [vmem:[#allocation8 + $0x1a4] ss:$8 sps:$4 sm:$0xff]  }
 0x176   :  { %2265 = vmatprep.subr.bf16.mxu0 %v5528_v63  ;;  %v5574_v63 = vld [vmem:[#allocation8 + $0x1a0] ss:$8 sps:$4 sm:$0xff]  }
 0x179   :  { %2266 = vmatpush1.bf16.msra.mxu0 %v5526_v0  ;;  %v5579_v0 = vld [vmem:[#allocation8 + $0x1b4] ss:$8 sps:$4 sm:$0xff]  }
 0x17a   :  { %2267 = vmatprep.subr.bf16.mxu0 %v5531_v1  ;;  %v5577_v1 = vld [vmem:[#allocation8 + $0x1b0] ss:$8 sps:$4 sm:$0xff]  }
 0x17d   :  { %2268 = vmatpush1.bf16.msra.mxu0 %v5529_v2  ;;  %v5582_v2 = vld [vmem:[#allocation8 + $0x1c4] ss:$8 sps:$4 sm:$0xff]  }
 0x17e   :  { %2269 = vmatprep.subr.bf16.mxu0 %v5534_v3  ;;  %v5580_v3 = vld [vmem:[#allocation8 + $0x1c0] ss:$8 sps:$4 sm:$0xff]  }
 0x181   :  { %2270 = vmatpush1.bf16.msra.mxu0 %v5532_v4  ;;  %v6372_v4 = vsub.s32 2, %v6347_v18 }
 0x182   :  { %2271 = vmatprep.subr.bf16.mxu0 %v5537_v5  ;;  %v5585_v5 = vld [vmem:[#allocation8 + $0x1d4] ss:$8 sps:$4 sm:$0xff]  }
 0x185   :  { %2272 = vmatpush1.bf16.msra.mxu0 %v5535_v6  ;;  %v5583_v6 = vld [vmem:[#allocation8 + $0x1d0] ss:$8 sps:$4 sm:$0xff]  }
 0x186   :  { %2273 = vmatprep.subr.bf16.mxu0 %v5540_v7  ;;  %v359_v7 = vrot.slane %v6355_v20, %v6372_v4  ;;  %v5603_v20 = vld [vmem:[#allocation10 + $0x64] ss:$16 sps:$4 sm:$0xff]  }
 0x187   :  { %2554 = vmatprep.subr.bf16.mxu1 %v5603_v20  ;;  %v5624_v20 = vld [vmem:[#allocation10 + $0x4c] ss:$16 sps:$4 sm:$0xff]  }
 0x189   :  { %2274 = vmatpush1.bf16.msra.mxu0 %v5538_v8  ;;  %v5588_v8 = vld [vmem:[#allocation8 + $0x1e4] ss:$8 sps:$4 sm:$0xff]  }
 0x18a   :  { %2275 = vmatprep.subr.bf16.mxu0 %v5543_v9  ;;  %v5586_v9 = vld [vmem:[#allocation8 + $0x1e0] ss:$8 sps:$4 sm:$0xff]  }
 0x18d   :  { %2276 = vmatpush1.bf16.msra.mxu0 %v5541_v10 }
 0x18e   :  { %2286 = vmatprep.subr.bf16.mxu0 %v5546_v12  ;;  %v5591_v12 = vld [vmem:[#allocation8 + $0x1f4] ss:$8 sps:$4 sm:$0xff]  }
 0x223   :  { %v1670_v26 = vpop.f32.mrb[0].mxu0  ;;  %v6369_v27 = vpop.f32.mrb[0].mxu1 }
 0x224   :  { %v5086_v28 = vadd.f32 %v1670_v26, %v351_v23  ;;  %v1672_v29 = vpop.f32.mrb[1].mxu0  ;;  %v1836_v30 = vpop.f32.mrb[1].mxu1  ;;  %v5088_v10 = vadd.f32 %v6369_v27, %v359_v7  ;;  %v5601_v23 = vld [vmem:[#allocation10 + $0x60] ss:$16 sps:$4 sm:$0xff]   ;;  %v5609_v26 = vld [vmem:[#allocation10 + $0xa4] ss:$16 sps:$4 sm:$0xff]  }
 0x225   :  { %v5087_v31 = vadd.f32 %v1672_v29, %v355_v24  ;;  %v5089_v32 = vadd.f32 %v1836_v30, %v363_v25  ;;  %v1674_v33 = vpop.f32.mrb[2].mxu0  ;;  %v1838_v34 = vpop.f32.mrb[2].mxu1  ;;  %2555 = vmatpush1.bf16.msra.mxu1 %v5601_v23  ;;  %v5606_v24 = vld [vmem:[#allocation10 + $0x84] ss:$16 sps:$4 sm:$0xff]   ;;  %v5604_v25 = vld [vmem:[#allocation10 + $0x80] ss:$16 sps:$4 sm:$0xff]  }
 0x226   :  { %v1841_v35 = vmax.f32 %v5086_v28, 0.0  ;;  %v1675_v36 = vpop.f32.mrb[3].mxu0  ;;  %v1839_v37 = vpop.f32.mrb[3].mxu1  ;;  %v1843_v14 = vmax.f32 %v5088_v10, 0.0  ;;  %2556 = vmatprep.subr.bf16.mxu1 %v5606_v24  ;;  %v5607_v27 = vld [vmem:[#allocation10 + $0xa0] ss:$16 sps:$4 sm:$0xff]  }
 0x227   :  { %v1842_v38 = vmax.f32 %v5087_v31, 0.0  ;;  %v1844_v39 = vmax.f32 %v5089_v32, 0.0  ;;  %v5612_v28 = vld [vmem:[#allocation10 + $0xc4] ss:$16 sps:$4 sm:$0xff]   ;;  %v5610_v29 = vld [vmem:[#allocation10 + $0xc0] ss:$16 sps:$4 sm:$0xff]  }
 0x228   :  { %v1845_v42 = vpack.c.bf16 %v1841_v35, %v1841_v35  ;;  %v1847_v15 = vpack.c.bf16 %v1843_v14, %v1843_v14  ;;  %v5615_v30 = vld [vmem:[#allocation10 + $0xe4] ss:$16 sps:$4 sm:$0xff]   ;;  %v5613_v31 = vld [vmem:[#allocation10 + $0xe0] ss:$16 sps:$4 sm:$0xff]   ;;  %v5618_v32 = vld [vmem:[#allocation10 + $0xc] ss:$16 sps:$4 sm:$0xff]  }
 0x229   :  { %v1846_v40 = vpack.c.bf16 %v1842_v38, %v1842_v38  ;;  %v1848_v44 = vpack.c.bf16 %v1844_v39, %v1844_v39  ;;  %2557 = vmatpush1.bf16.msra.mxu1 %v5604_v25  ;;  %v5643_v33 = vld [vmem:[#allocation11 + $0x8] ss:$28 sps:$4 sm:$0xff]   ;;  %v5649_v36 = vld [vmem:[#allocation11 + $0x40] ss:$28 sps:$4 sm:$0xff]   ;;  %v5655_v38 = vld [vmem:[#allocation11 + $0x78] ss:$28 sps:$4 sm:$0xff]  }
 0x22a   :  { %2558 = vmatprep.subr.bf16.mxu1 %v5609_v26  ;;  %v5645_v34 = vld [vmem:[#allocation11 + $0xc] ss:$28 sps:$4 sm:$0xff]   ;;  %v5651_v35 = vld [vmem:[#allocation11 + $0x44] ss:$28 sps:$4 sm:$0xff]   ;;  %v5657_v37 = vld [vmem:[#allocation11 + $0x7c] ss:$28 sps:$4 sm:$0xff]  }
 0x22b   :  { %2277 = vmatprep.mubr.bf16.mxu0 %v1846_v40  ;;  %v5663_v39 = vld [vmem:[#allocation11 + $0xb4] ss:$28 sps:$4 sm:$0xff]   ;;  %v5616_v14 = vld [vmem:[#allocation10 + $0x8] ss:$16 sps:$4 sm:$0xff]   ;;  %v5627_v24 = vld [vmem:[#allocation10 + $0x6c] ss:$16 sps:$4 sm:$0xff]  }
 0x22c   :  { %2278 = vmatmul.mubr.bf16.vlgmr.msra.gmra.mrb[4].mxu0 %v1845_v42  ;;  %v5661_v40 = vld [vmem:[#allocation11 + $0xb0] ss:$28 sps:$4 sm:$0xff]   ;;  %v5667_v42 = vld [vmem:[#allocation11 + $0xe8] ss:$28 sps:$4 sm:$0xff]  }
 0x22d   :  { %2287 = vmatpush1.bf16.msra.mxu0 %v5544_v41  ;;  %2318 = vmatprep.mubr.bf16.mxu0 %v1848_v44  ;;  %v5669_v41 = vld [vmem:[#allocation11 + $0xec] ss:$28 sps:$4 sm:$0xff]   ;;  %v5673_v44 = vld [vmem:[#allocation11 + $0x120] ss:$28 sps:$4 sm:$0xff]  }
 0x22e   :  { %2288 = vmatprep.subr.bf16.mxu0 %v5549_v43  ;;  %2559 = vmatpush1.bf16.msra.mxu1 %v5607_v27  ;;  %v5675_v43 = vld [vmem:[#allocation11 + $0x124] ss:$28 sps:$4 sm:$0xff]   ;;  %v5622_v23 = vld [vmem:[#allocation10 + $0x48] ss:$16 sps:$4 sm:$0xff]   ;;  %v5630_v26 = vld [vmem:[#allocation10 + $0x8c] ss:$16 sps:$4 sm:$0xff]  }
 0x22f   :  { %2560 = vmatprep.subr.bf16.mxu1 %v5612_v28  ;;  %v5625_v25 = vld [vmem:[#allocation10 + $0x68] ss:$16 sps:$4 sm:$0xff]   ;;  %v5633_v28 = vld [vmem:[#allocation10 + $0xac] ss:$16 sps:$4 sm:$0xff]  }
 0x230   :  { %v5628_v27 = vld [vmem:[#allocation10 + $0x88] ss:$16 sps:$4 sm:$0xff]  }
 0x231   :  { %2289 = vmatpush1.bf16.msra.mxu0 %v5547_v45  ;;  %v5681_v45 = vld [vmem:[#allocation11 + $0x15c] ss:$28 sps:$4 sm:$0xff]  }
 0x232   :  { %2290 = vmatprep.subr.bf16.mxu0 %v5552_v46  ;;  %2561 = vmatpush1.bf16.msra.mxu1 %v5610_v29  ;;  %v5679_v46 = vld [vmem:[#allocation11 + $0x158] ss:$28 sps:$4 sm:$0xff]  }
 0x233   :  { %2562 = vmatprep.subr.bf16.mxu1 %v5615_v30  ;;  %v5631_v29 = vld [vmem:[#allocation10 + $0xa8] ss:$16 sps:$4 sm:$0xff]   ;;  %v5636_v30 = vld [vmem:[#allocation10 + $0xcc] ss:$16 sps:$4 sm:$0xff]  }
 0x235   :  { %2291 = vmatpush1.bf16.msra.mxu0 %v5550_v47  ;;  %v5687_v47 = vld [vmem:[#allocation11 + $0x194] ss:$28 sps:$4 sm:$0xff]  }
 0x236   :  { %2292 = vmatprep.subr.bf16.mxu0 %v5555_v48  ;;  %2563 = vmatpush1.bf16.msra.mxu1 %v5613_v31  ;;  %v5685_v48 = vld [vmem:[#allocation11 + $0x190] ss:$28 sps:$4 sm:$0xff]  }
 0x237   :  { %2589 = vmatprep.subr.bf16.mxu1 %v5618_v32  ;;  %v5639_v31 = vld [vmem:[#allocation10 + $0xec] ss:$16 sps:$4 sm:$0xff]   ;;  %v5637_v32 = vld [vmem:[#allocation10 + $0xe8] ss:$16 sps:$4 sm:$0xff]  }
 0x239   :  { %2293 = vmatpush1.bf16.msra.mxu0 %v5553_v49  ;;  %v5693_v49 = vld [vmem:[#allocation11 + $0x1cc] ss:$28 sps:$4 sm:$0xff]  }
 0x23a   :  { %2294 = vmatprep.subr.bf16.mxu0 %v5558_v50  ;;  %v5691_v50 = vld [vmem:[#allocation11 + $0x1c8] ss:$28 sps:$4 sm:$0xff]  }
 0x23d   :  { %2295 = vmatpush1.bf16.msra.mxu0 %v5556_v51  ;;  %v5699_v51 = vld [vmem:[#allocation11 + $0x204] ss:$28 sps:$4 sm:$0xff]  }
 0x23e   :  { %2296 = vmatprep.subr.bf16.mxu0 %v5561_v52  ;;  %v5697_v52 = vld [vmem:[#allocation11 + $0x200] ss:$28 sps:$4 sm:$0xff]  }
 0x241   :  { %2297 = vmatpush1.bf16.msra.mxu0 %v5559_v53  ;;  %v5705_v53 = vld [vmem:[#allocation11 + $0x23c] ss:$28 sps:$4 sm:$0xff]  }
 0x242   :  { %2298 = vmatprep.subr.bf16.mxu0 %v5564_v54  ;;  %v5703_v54 = vld [vmem:[#allocation11 + $0x238] ss:$28 sps:$4 sm:$0xff]  }
 0x245   :  { %2299 = vmatpush1.bf16.msra.mxu0 %v5562_v55  ;;  %v5711_v55 = vld [vmem:[#allocation11 + $0x274] ss:$28 sps:$4 sm:$0xff]  }
 0x246   :  { %2300 = vmatprep.subr.bf16.mxu0 %v5567_v56  ;;  %v5709_v56 = vld [vmem:[#allocation11 + $0x270] ss:$28 sps:$4 sm:$0xff]  }
 0x249   :  { %2301 = vmatpush1.bf16.msra.mxu0 %v5565_v57  ;;  %v5717_v57 = vld [vmem:[#allocation11 + $0x2ac] ss:$28 sps:$4 sm:$0xff]  }
 0x24a   :  { %2302 = vmatprep.subr.bf16.mxu0 %v5570_v58  ;;  %v5715_v58 = vld [vmem:[#allocation11 + $0x2a8] ss:$28 sps:$4 sm:$0xff]  }
 0x24d   :  { %2303 = vmatpush1.bf16.msra.mxu0 %v5568_v59  ;;  %v5723_v59 = vld [vmem:[#allocation11 + $0x2e4] ss:$28 sps:$4 sm:$0xff]  }
 0x24e   :  { %2304 = vmatprep.subr.bf16.mxu0 %v5573_v60  ;;  %v5721_v60 = vld [vmem:[#allocation11 + $0x2e0] ss:$28 sps:$4 sm:$0xff]  }
 0x251   :  { %2305 = vmatpush1.bf16.msra.mxu0 %v5571_v61  ;;  %v1913_v61 = vld [vmem:[%s6471_s5] sm:$0x3] }
 0x252   :  { %2306 = vmatprep.subr.bf16.mxu0 %v5576_v62  ;;  %v1918_v62 = vrot.slane %v1913_v61, %v6350_v19 }
 0x255   :  { %2307 = vmatpush1.bf16.msra.mxu0 %v5574_v63  ;;  %v1922_v63 = vrot.slane %v1913_v61, %v6358_v21  ;;  %v5726_v61 = vld [vmem:[#allocation11 + $0x314] ss:$28 sps:$4 sm:$0xff]  }
 0x256   :  { %2308 = vmatprep.subr.bf16.mxu0 %v5579_v0 }
 0x259   :  { %2309 = vmatpush1.bf16.msra.mxu0 %v5577_v1 }
 0x25a   :  { %2310 = vmatprep.subr.bf16.mxu0 %v5582_v2 }
 0x25d   :  { %2311 = vmatpush1.bf16.msra.mxu0 %v5580_v3 }
 0x25e   :  { %2312 = vmatprep.subr.bf16.mxu0 %v5585_v5 }
 0x261   :  { %2313 = vmatpush1.bf16.msra.mxu0 %v5583_v6 }
 0x262   :  { %2314 = vmatprep.subr.bf16.mxu0 %v5588_v8 }
 0x265   :  { %2315 = vmatpush1.bf16.msra.mxu0 %v5586_v9  ;;  %v2330_v9 = vld [vmem:[#allocation5] sm:$0xff] }
 0x266   :  { %2316 = vmatprep.subr.bf16.mxu0 %v5591_v12 }
 0x269   :  { %2317 = vmatpush1.bf16.msra.mxu0 %v5589_v13 }
 0x26a   :  { %4165 = vmatprep.subr.bf16.mxu0 %v5645_v34  ;;  %v5640_v34 = vld [vmem:[#allocation11] ss:$28 sps:$4 sm:$0xff]  }
 0x26c   :  { %2319 = vmatmul.mubr.bf16.vlgmr.msra.gmra.mrb[4].mxu0 %v1847_v15 }
 0x26d   :  { %4166 = vmatpush1.bf16.msra.mxu0 %v5643_v33  ;;  %v5642_v33 = vld [vmem:[#allocation11 + $0x4] ss:$28 sps:$4 sm:$0xff]  }
 0x26e   :  { %4167 = vmatprep.subr.bf16.mxu0 %v5651_v35  ;;  %v5648_v35 = vld [vmem:[#allocation11 + $0x3c] ss:$28 sps:$4 sm:$0xff]  }
 0x271   :  { %4168 = vmatpush1.bf16.msra.mxu0 %v5649_v36  ;;  %v5646_v36 = vld [vmem:[#allocation11 + $0x38] ss:$28 sps:$4 sm:$0xff]  }
 0x272   :  { %4169 = vmatprep.subr.bf16.mxu0 %v5657_v37  ;;  %v5654_v37 = vld [vmem:[#allocation11 + $0x74] ss:$28 sps:$4 sm:$0xff]  }
 0x275   :  { %4170 = vmatpush1.bf16.msra.mxu0 %v5655_v38  ;;  %v5652_v38 = vld [vmem:[#allocation11 + $0x70] ss:$28 sps:$4 sm:$0xff]  }
 0x276   :  { %4171 = vmatprep.subr.bf16.mxu0 %v5663_v39  ;;  %v5660_v39 = vld [vmem:[#allocation11 + $0xac] ss:$28 sps:$4 sm:$0xff]  }
 0x279   :  { %4172 = vmatpush1.bf16.msra.mxu0 %v5661_v40  ;;  %v5658_v40 = vld [vmem:[#allocation11 + $0xa8] ss:$28 sps:$4 sm:$0xff]  }
 0x27a   :  { %4173 = vmatprep.subr.bf16.mxu0 %v5669_v41  ;;  %v5666_v41 = vld [vmem:[#allocation11 + $0xe4] ss:$28 sps:$4 sm:$0xff]  }
 0x27d   :  { %4174 = vmatpush1.bf16.msra.mxu0 %v5667_v42  ;;  %v5664_v42 = vld [vmem:[#allocation11 + $0xe0] ss:$28 sps:$4 sm:$0xff]  }
 0x27e   :  { %4175 = vmatprep.subr.bf16.mxu0 %v5675_v43  ;;  %v5672_v43 = vld [vmem:[#allocation11 + $0x11c] ss:$28 sps:$4 sm:$0xff]  }
 0x281   :  { %4176 = vmatpush1.bf16.msra.mxu0 %v5673_v44  ;;  %v5670_v44 = vld [vmem:[#allocation11 + $0x118] ss:$28 sps:$4 sm:$0xff]  }
 0x282   :  { %4177 = vmatprep.subr.bf16.mxu0 %v5681_v45  ;;  %v5678_v45 = vld [vmem:[#allocation11 + $0x154] ss:$28 sps:$4 sm:$0xff]  }
 0x285   :  { %4178 = vmatpush1.bf16.msra.mxu0 %v5679_v46  ;;  %v5676_v46 = vld [vmem:[#allocation11 + $0x150] ss:$28 sps:$4 sm:$0xff]  }
 0x286   :  { %4179 = vmatprep.subr.bf16.mxu0 %v5687_v47  ;;  %v5684_v47 = vld [vmem:[#allocation11 + $0x18c] ss:$28 sps:$4 sm:$0xff]  }
 0x289   :  { %4180 = vmatpush1.bf16.msra.mxu0 %v5685_v48  ;;  %v5682_v48 = vld [vmem:[#allocation11 + $0x188] ss:$28 sps:$4 sm:$0xff]  }
 0x28a   :  { %4181 = vmatprep.subr.bf16.mxu0 %v5693_v49  ;;  %v5690_v49 = vld [vmem:[#allocation11 + $0x1c4] ss:$28 sps:$4 sm:$0xff]  }
 0x28d   :  { %4182 = vmatpush1.bf16.msra.mxu0 %v5691_v50  ;;  %v5688_v50 = vld [vmem:[#allocation11 + $0x1c0] ss:$28 sps:$4 sm:$0xff]  }
 0x28e   :  { %4183 = vmatprep.subr.bf16.mxu0 %v5699_v51  ;;  %v5696_v51 = vld [vmem:[#allocation11 + $0x1fc] ss:$28 sps:$4 sm:$0xff]  }
 0x291   :  { %4184 = vmatpush1.bf16.msra.mxu0 %v5697_v52  ;;  %v5694_v52 = vld [vmem:[#allocation11 + $0x1f8] ss:$28 sps:$4 sm:$0xff]  }
 0x292   :  { %4185 = vmatprep.subr.bf16.mxu0 %v5705_v53  ;;  %v5702_v53 = vld [vmem:[#allocation11 + $0x234] ss:$28 sps:$4 sm:$0xff]  }
 0x295   :  { %4186 = vmatpush1.bf16.msra.mxu0 %v5703_v54  ;;  %v5700_v54 = vld [vmem:[#allocation11 + $0x230] ss:$28 sps:$4 sm:$0xff]  }
 0x296   :  { %4187 = vmatprep.subr.bf16.mxu0 %v5711_v55  ;;  %v5708_v55 = vld [vmem:[#allocation11 + $0x26c] ss:$28 sps:$4 sm:$0xff]  }
 0x299   :  { %4188 = vmatpush1.bf16.msra.mxu0 %v5709_v56  ;;  %v5706_v56 = vld [vmem:[#allocation11 + $0x268] ss:$28 sps:$4 sm:$0xff]  }
 0x29a   :  { %4189 = vmatprep.subr.bf16.mxu0 %v5717_v57  ;;  %v5714_v57 = vld [vmem:[#allocation11 + $0x2a4] ss:$28 sps:$4 sm:$0xff]  }
 0x29d   :  { %4190 = vmatpush1.bf16.msra.mxu0 %v5715_v58  ;;  %v5712_v58 = vld [vmem:[#allocation11 + $0x2a0] ss:$28 sps:$4 sm:$0xff]  }
 0x29e   :  { %4191 = vmatprep.subr.bf16.mxu0 %v5723_v59  ;;  %v5720_v59 = vld [vmem:[#allocation11 + $0x2dc] ss:$28 sps:$4 sm:$0xff]  }
 0x2a1   :  { %4192 = vmatpush1.bf16.msra.mxu0 %v5721_v60  ;;  %v5718_v60 = vld [vmem:[#allocation11 + $0x2d8] ss:$28 sps:$4 sm:$0xff]  }
 0x33f   :  { %v2320_v0 = vpop.f32.mrb[4].mxu0 }
 0x340   :  { %v5090_v1 = vadd.f32 %v2320_v0, %v1918_v62  ;;  %v2322_v2 = vpop.f32.mrb[5].mxu0  ;;  %v5729_v62 = vld [vmem:[#allocation11 + $0x31c] ss:$28 sps:$4 sm:$0xff]   ;;  %v5724_v0 = vld [vmem:[#allocation11 + $0x310] ss:$28 sps:$4 sm:$0xff]  }
 0x341   :  { %v5091_v3 = vadd.f32 %v2322_v2, %v1922_v63  ;;  %v2324_v5 = vpop.f32.mrb[6].mxu0  ;;  %v5727_v63 = vld [vmem:[#allocation11 + $0x318] ss:$28 sps:$4 sm:$0xff]   ;;  %4193 = vmatprep.subr.bf16.mxu0 %v5729_v62  ;;  %v5789_v62 = vld [vmem:[#allocation11 + $0x54c] ss:$28 sps:$4 sm:$0xff]  }
 0x342   :  { %4449 = vst [vmem:[#allocation14] sm:$0xff] %v5090_v1  ;;  %v2325_v6 = vpop.f32.mrb[7].mxu0  ;;  %4194 = vmatpush1.bf16.msra.mxu0 %v5727_v63  ;;  %v5735_v2 = vld [vmem:[#allocation11 + $0x354] ss:$28 sps:$4 sm:$0xff]   ;;  %v5730_v5 = vld [vmem:[#allocation11 + $0x348] ss:$28 sps:$4 sm:$0xff]  }
 0x343   :  { %v2327_v7 = vmul.f32 0.5, %v5091_v3  ;;  %4450 = vst [vmem:[#allocation14 + $0x8] sm:$0xff] %v5091_v3  ;;  %v5733_v3 = vld [vmem:[#allocation11 + $0x350] ss:$28 sps:$4 sm:$0xff]   ;;  %4195 = vmatprep.subr.bf16.mxu0 %v5735_v2  ;;  %v5738_v6 = vld [vmem:[#allocation11 + $0x384] ss:$28 sps:$4 sm:$0xff]  }
 0x344   :  { %v5787_v2 = vld [vmem:[#allocation11 + $0x548] ss:$28 sps:$4 sm:$0xff]  }
 0x345   :  { %v2328_v8 = vmul.f32 1.442695, %v2327_v7  ;;  %v5741_v7 = vld [vmem:[#allocation11 + $0x38c] ss:$28 sps:$4 sm:$0xff]  }
 0x346   :  { %4196 = vmatpush1.bf16.msra.mxu0 %v5733_v3  ;;  %v5792_v3 = vld [vmem:[#allocation11 + $0x57c] ss:$28 sps:$4 sm:$0xff]  }
 0x347   :  { %5960 = vpow2.f32 %v2328_v8  ;;  %4206 = vmatprep.subr.bf16.mxu0 %v5741_v7  ;;  %v6386_v8 = vld [vmem:[%s6473_s7] sm:$0xf] }
 0x348   :  { %v5793_v7 = vld [vmem:[#allocation11 + $0x580] ss:$28 sps:$4 sm:$0xff]  }
 0x351   :  { %v5961_v10 = vpop.eup %5960 }
 0x352   :  { %v2331_v12 = vmul.f32 %v5961_v10, %v2330_v9  ;;  %v2371_v9 = vrot.slane %v6386_v8, %v6350_v19  ;;  %v2375_v10 = vrot.slane %v6386_v8, %v6358_v21 }
 0x354   :  { %v2332_v13 = vadd.f32 %v5090_v1, %v2331_v12  ;;  %v5732_v1 = vld [vmem:[#allocation11 + $0x34c] ss:$28 sps:$4 sm:$0xff]  }
 0x356   :  { %v2333_v15 = vpack.c.bf16 %v2332_v13, %v2332_v13 }
 0x358   :  { %2581 = vmatmul.mubr.bf16.vlgmr.msra.gmra.mrb[4].mxu1 %v2333_v15 }
 0x359   :  { %2590 = vmatpush1.bf16.msra.mxu1 %v5616_v14  ;;  %2621 = vmatprep.mubr.bf16.mxu1 %v6176_v22  ;;  %v5634_v22 = vld [vmem:[#allocation10 + $0xc8] ss:$16 sps:$4 sm:$0xff]  }
 0x35a   :  { %2591 = vmatprep.subr.bf16.mxu1 %v5621_v16 }
 0x35d   :  { %2592 = vmatpush1.bf16.msra.mxu1 %v5619_v17 }
 0x35e   :  { %2593 = vmatprep.subr.bf16.mxu1 %v5624_v20 }
 0x361   :  { %2594 = vmatpush1.bf16.msra.mxu1 %v5622_v23 }
 0x362   :  { %2595 = vmatprep.subr.bf16.mxu1 %v5627_v24 }
 0x365   :  { %2596 = vmatpush1.bf16.msra.mxu1 %v5625_v25  ;;  %v5736_v25 = vld [vmem:[#allocation11 + $0x380] ss:$28 sps:$4 sm:$0xff]  }
 0x366   :  { %2597 = vmatprep.subr.bf16.mxu1 %v5630_v26  ;;  %v5739_v26 = vld [vmem:[#allocation11 + $0x388] ss:$28 sps:$4 sm:$0xff]  }
 0x369   :  { %2598 = vmatpush1.bf16.msra.mxu1 %v5628_v27 }
 0x36a   :  { %2599 = vmatprep.subr.bf16.mxu1 %v5633_v28  ;;  %v5744_v28 = vld [vmem:[#allocation11 + $0x3bc] ss:$28 sps:$4 sm:$0xff]  }
 0x36d   :  { %2600 = vmatpush1.bf16.msra.mxu1 %v5631_v29  ;;  %v5747_v29 = vld [vmem:[#allocation11 + $0x3c4] ss:$28 sps:$4 sm:$0xff]  }
 0x36e   :  { %2601 = vmatprep.subr.bf16.mxu1 %v5636_v30  ;;  %v5742_v30 = vld [vmem:[#allocation11 + $0x3b8] ss:$28 sps:$4 sm:$0xff]  }
 0x371   :  { %2602 = vmatpush1.bf16.msra.mxu1 %v5634_v22  ;;  %v5745_v22 = vld [vmem:[#allocation11 + $0x3c0] ss:$28 sps:$4 sm:$0xff]  }
 0x372   :  { %2603 = vmatprep.subr.bf16.mxu1 %v5639_v31  ;;  %v5750_v31 = vld [vmem:[#allocation11 + $0x3f4] ss:$28 sps:$4 sm:$0xff]  }
 0x375   :  { %2604 = vmatpush1.bf16.msra.mxu1 %v5637_v32  ;;  %v5753_v32 = vld [vmem:[#allocation11 + $0x3fc] ss:$28 sps:$4 sm:$0xff]  }
 0x376   :  { %4083 = vmatprep.subr.bf16.mxu1 %v5642_v33  ;;  %v5748_v33 = vld [vmem:[#allocation11 + $0x3f0] ss:$28 sps:$4 sm:$0xff]  }
 0x378   :  { %2622 = vmatmul.mubr.bf16.vlgmr.msra.gmra.mrb[8].mxu1 %v2333_v15 }
 0x379   :  { %4084 = vmatpush1.bf16.msra.mxu1 %v5640_v34  ;;  %v5751_v34 = vld [vmem:[#allocation11 + $0x3f8] ss:$28 sps:$4 sm:$0xff]  }
 0x37a   :  { %4085 = vmatprep.subr.bf16.mxu1 %v5648_v35  ;;  %v5756_v35 = vld [vmem:[#allocation11 + $0x42c] ss:$28 sps:$4 sm:$0xff]  }
 0x37d   :  { %4086 = vmatpush1.bf16.msra.mxu1 %v5646_v36  ;;  %v5759_v36 = vld [vmem:[#allocation11 + $0x434] ss:$28 sps:$4 sm:$0xff]  }
 0x37e   :  { %4087 = vmatprep.subr.bf16.mxu1 %v5654_v37  ;;  %v5754_v37 = vld [vmem:[#allocation11 + $0x428] ss:$28 sps:$4 sm:$0xff]  }
 0x381   :  { %4088 = vmatpush1.bf16.msra.mxu1 %v5652_v38  ;;  %v5757_v38 = vld [vmem:[#allocation11 + $0x430] ss:$28 sps:$4 sm:$0xff]  }
 0x382   :  { %4089 = vmatprep.subr.bf16.mxu1 %v5660_v39  ;;  %v5762_v39 = vld [vmem:[#allocation11 + $0x464] ss:$28 sps:$4 sm:$0xff]  }
 0x385   :  { %4090 = vmatpush1.bf16.msra.mxu1 %v5658_v40  ;;  %v5765_v40 = vld [vmem:[#allocation11 + $0x46c] ss:$28 sps:$4 sm:$0xff]  }
 0x386   :  { %4091 = vmatprep.subr.bf16.mxu1 %v5666_v41  ;;  %v5760_v41 = vld [vmem:[#allocation11 + $0x460] ss:$28 sps:$4 sm:$0xff]  }
 0x389   :  { %4092 = vmatpush1.bf16.msra.mxu1 %v5664_v42  ;;  %v5763_v42 = vld [vmem:[#allocation11 + $0x468] ss:$28 sps:$4 sm:$0xff]  }
 0x38a   :  { %4093 = vmatprep.subr.bf16.mxu1 %v5672_v43  ;;  %v5768_v43 = vld [vmem:[#allocation11 + $0x49c] ss:$28 sps:$4 sm:$0xff]  }
 0x38d   :  { %4094 = vmatpush1.bf16.msra.mxu1 %v5670_v44  ;;  %v5771_v44 = vld [vmem:[#allocation11 + $0x4a4] ss:$28 sps:$4 sm:$0xff]  }
 0x38e   :  { %4095 = vmatprep.subr.bf16.mxu1 %v5678_v45  ;;  %v5766_v45 = vld [vmem:[#allocation11 + $0x498] ss:$28 sps:$4 sm:$0xff]  }
 0x391   :  { %4096 = vmatpush1.bf16.msra.mxu1 %v5676_v46  ;;  %v5769_v46 = vld [vmem:[#allocation11 + $0x4a0] ss:$28 sps:$4 sm:$0xff]  }
 0x392   :  { %4097 = vmatprep.subr.bf16.mxu1 %v5684_v47  ;;  %v5774_v47 = vld [vmem:[#allocation11 + $0x4d4] ss:$28 sps:$4 sm:$0xff]  }
 0x395   :  { %4098 = vmatpush1.bf16.msra.mxu1 %v5682_v48  ;;  %v5777_v48 = vld [vmem:[#allocation11 + $0x4dc] ss:$28 sps:$4 sm:$0xff]  }
 0x396   :  { %4099 = vmatprep.subr.bf16.mxu1 %v5690_v49  ;;  %v2383_v49 = vrot.slane %v6386_v8, %v6361_v11 }
 0x399   :  { %4100 = vmatpush1.bf16.msra.mxu1 %v5688_v50  ;;  %v5772_v50 = vld [vmem:[#allocation11 + $0x4d0] ss:$28 sps:$4 sm:$0xff]  }
 0x39a   :  { %4101 = vmatprep.subr.bf16.mxu1 %v5696_v51  ;;  %v5775_v51 = vld [vmem:[#allocation11 + $0x4d8] ss:$28 sps:$4 sm:$0xff]  }
 0x39d   :  { %4102 = vmatpush1.bf16.msra.mxu1 %v5694_v52  ;;  %v5780_v52 = vld [vmem:[#allocation11 + $0x50c] ss:$28 sps:$4 sm:$0xff]  }
 0x39e   :  { %4103 = vmatprep.subr.bf16.mxu1 %v5702_v53  ;;  %v5783_v53 = vld [vmem:[#allocation11 + $0x514] ss:$28 sps:$4 sm:$0xff]  }
 0x3a1   :  { %4104 = vmatpush1.bf16.msra.mxu1 %v5700_v54 }
 0x3a2   :  { %4105 = vmatprep.subr.bf16.mxu1 %v5708_v55 }
 0x3a5   :  { %4106 = vmatpush1.bf16.msra.mxu1 %v5706_v56 }
 0x3a6   :  { %4107 = vmatprep.subr.bf16.mxu1 %v5714_v57 }
 0x3a9   :  { %4108 = vmatpush1.bf16.msra.mxu1 %v5712_v58  ;;  %v5778_v58 = vld [vmem:[#allocation11 + $0x508] ss:$28 sps:$4 sm:$0xff]  }
 0x3aa   :  { %4109 = vmatprep.subr.bf16.mxu1 %v5720_v59  ;;  %v5781_v59 = vld [vmem:[#allocation11 + $0x510] ss:$28 sps:$4 sm:$0xff]  }
 0x3ad   :  { %4110 = vmatpush1.bf16.msra.mxu1 %v5718_v60 }
 0x3ae   :  { %4111 = vmatprep.subr.bf16.mxu1 %v5726_v61  ;;  %v5786_v61 = vld [vmem:[#allocation11 + $0x544] ss:$28 sps:$4 sm:$0xff]  }
 0x3b1   :  { %4112 = vmatpush1.bf16.msra.mxu1 %v5724_v0 }
 0x3b2   :  { %4113 = vmatprep.subr.bf16.mxu1 %v5732_v1  ;;  %v5784_v1 = vld [vmem:[#allocation11 + $0x540] ss:$28 sps:$4 sm:$0xff]  }
 0x3b5   :  { %4114 = vmatpush1.bf16.msra.mxu1 %v5730_v5  ;;  %v5795_v5 = vld [vmem:[#allocation11 + $0x584] ss:$28 sps:$4 sm:$0xff]  }
 0x3b6   :  { %4124 = vmatprep.subr.bf16.mxu1 %v5738_v6  ;;  %v5790_v6 = vld [vmem:[#allocation11 + $0x578] ss:$28 sps:$4 sm:$0xff]  }
 0x42b   :  { %v2582_v12 = vpop.f32.mrb[4].mxu1 }
 0x42c   :  { %v2583_v13 = vadd.f32 %v2582_v12, %v2371_v9  ;;  %v2584_v14 = vpop.f32.mrb[5].mxu1  ;;  %v5798_v9 = vld [vmem:[#allocation11 + $0x5b4] ss:$28 sps:$4 sm:$0xff]  }
 0x42d   :  { %v2585_v15 = vadd.f32 %v2584_v14, %v2375_v10  ;;  %v2586_v16 = vpop.f32.mrb[6].mxu1  ;;  %v5801_v10 = vld [vmem:[#allocation11 + $0x5bc] ss:$28 sps:$4 sm:$0xff]   ;;  %v5796_v12 = vld [vmem:[#allocation11 + $0x5b0] ss:$28 sps:$4 sm:$0xff]  }
 0x42e   :  { %v2630_v17 = vmax.f32 %v2583_v13, 0.0  ;;  %v2587_v20 = vpop.f32.mrb[7].mxu1  ;;  %v5799_v13 = vld [vmem:[#allocation11 + $0x5b8] ss:$28 sps:$4 sm:$0xff]   ;;  %v5804_v14 = vld [vmem:[#allocation11 + $0x5ec] ss:$28 sps:$4 sm:$0xff]  }
 0x42f   :  { %v2631_v23 = vmax.f32 %v2585_v15, 0.0  ;;  %v5807_v15 = vld [vmem:[#allocation11 + $0x5f4] ss:$28 sps:$4 sm:$0xff]   ;;  %v5802_v16 = vld [vmem:[#allocation11 + $0x5e8] ss:$28 sps:$4 sm:$0xff]  }
 0x430   :  { %v6394_v27 = vpack.c.bf16 %v2630_v17, %v2630_v17  ;;  %v5805_v17 = vld [vmem:[#allocation11 + $0x5f0] ss:$28 sps:$4 sm:$0xff]   ;;  %v5810_v20 = vld [vmem:[#allocation11 + $0x624] ss:$28 sps:$4 sm:$0xff]  }
 0x431   :  { %v6392_v24 = vpack.c.bf16 %v2631_v23, %v2631_v23  ;;  %v5813_v23 = vld [vmem:[#allocation11 + $0x62c] ss:$28 sps:$4 sm:$0xff]  }
 0x433   :  { %4115 = vmatprep.mubr.bf16.mxu1 %v6392_v24  ;;  %4197 = vmatprep.mubr.bf16.mxu0 %v6392_v24 }
 0x434   :  { %4116 = vmatmul.mubr.bf16.vlgmr.msra.gmra.mrb[12].mxu1 %v6394_v27  ;;  %4198 = vmatmul.mubr.bf16.vlgmr.msra.gmra.mrb[8].mxu0 %v6394_v27 }
 0x435   :  { %4125 = vmatpush1.bf16.msra.mxu1 %v5736_v25  ;;  %4207 = vmatpush1.bf16.msra.mxu0 %v5739_v26  ;;  %v5808_v25 = vld [vmem:[#allocation11 + $0x620] ss:$28 sps:$4 sm:$0xff]   ;;  %v5811_v26 = vld [vmem:[#allocation11 + $0x628] ss:$28 sps:$4 sm:$0xff]  }
 0x436   :  { %4126 = vmatprep.subr.bf16.mxu1 %v5744_v28  ;;  %4208 = vmatprep.subr.bf16.mxu0 %v5747_v29  ;;  %v5816_v28 = vld [vmem:[#allocation11 + $0x65c] ss:$28 sps:$4 sm:$0xff]   ;;  %v5819_v29 = vld [vmem:[#allocation11 + $0x664] ss:$28 sps:$4 sm:$0xff]  }
 0x439   :  { %4127 = vmatpush1.bf16.msra.mxu1 %v5742_v30  ;;  %4209 = vmatpush1.bf16.msra.mxu0 %v5745_v22  ;;  %v5814_v30 = vld [vmem:[#allocation11 + $0x658] ss:$28 sps:$4 sm:$0xff]   ;;  %v5817_v22 = vld [vmem:[#allocation11 + $0x660] ss:$28 sps:$4 sm:$0xff]  }
 0x43a   :  { %4128 = vmatprep.subr.bf16.mxu1 %v5750_v31  ;;  %4210 = vmatprep.subr.bf16.mxu0 %v5753_v32  ;;  %v2379_v31 = vrot.slane %v6386_v8, %v6372_v4  ;;  %v5822_v32 = vld [vmem:[#allocation11 + $0x694] ss:$28 sps:$4 sm:$0xff]  }
 0x43b   :  { %v5834_v8 = vld [vmem:[#allocation11 + $0x14] ss:$28 sps:$4 sm:$0xff]  }
 0x43d   :  { %4129 = vmatpush1.bf16.msra.mxu1 %v5748_v33  ;;  %4211 = vmatpush1.bf16.msra.mxu0 %v5751_v34  ;;  %v5825_v33 = vld [vmem:[#allocation11 + $0x69c] ss:$28 sps:$4 sm:$0xff]   ;;  %v5820_v34 = vld [vmem:[#allocation11 + $0x690] ss:$28 sps:$4 sm:$0xff]  }
 0x43e   :  { %4130 = vmatprep.subr.bf16.mxu1 %v5756_v35  ;;  %4212 = vmatprep.subr.bf16.mxu0 %v5759_v36  ;;  %v5823_v35 = vld [vmem:[#allocation11 + $0x698] ss:$28 sps:$4 sm:$0xff]  }
 0x441   :  { %4131 = vmatpush1.bf16.msra.mxu1 %v5754_v37  ;;  %4213 = vmatpush1.bf16.msra.mxu0 %v5757_v38  ;;  %v5828_v37 = vld [vmem:[#allocation11 + $0x6cc] ss:$28 sps:$4 sm:$0xff]   ;;  %v5831_v38 = vld [vmem:[#allocation11 + $0x6d4] ss:$28 sps:$4 sm:$0xff]  }
 0x442   :  { %4132 = vmatprep.subr.bf16.mxu1 %v5762_v39  ;;  %4214 = vmatprep.subr.bf16.mxu0 %v5765_v40  ;;  %v5826_v39 = vld [vmem:[#allocation11 + $0x6c8] ss:$28 sps:$4 sm:$0xff]   ;;  %v5829_v40 = vld [vmem:[#allocation11 + $0x6d0] ss:$28 sps:$4 sm:$0xff]  }
 0x445   :  { %4133 = vmatpush1.bf16.msra.mxu1 %v5760_v41  ;;  %4215 = vmatpush1.bf16.msra.mxu0 %v5763_v42  ;;  %v5835_v42 = vld [vmem:[#allocation11 + $0x1d8] ss:$28 sps:$4 sm:$0xff]  }
 0x446   :  { %4134 = vmatprep.subr.bf16.mxu1 %v5768_v43  ;;  %4216 = vmatprep.subr.bf16.mxu0 %v5771_v44  ;;  %v5832_v43 = vld [vmem:[#allocation11 + $0x10] ss:$28 sps:$4 sm:$0xff]  }
 0x449   :  { %4135 = vmatpush1.bf16.msra.mxu1 %v5766_v45  ;;  %4217 = vmatpush1.bf16.msra.mxu0 %v5769_v46  ;;  %v5836_v45 = vld [vmem:[#allocation11 + $0x18] ss:$28 sps:$4 sm:$0xff]   ;;  %v5839_v46 = vld [vmem:[#allocation11 + $0x4c] ss:$28 sps:$4 sm:$0xff]  }
 0x44a   :  { %4136 = vmatprep.subr.bf16.mxu1 %v5774_v47  ;;  %4218 = vmatprep.subr.bf16.mxu0 %v5777_v48  ;;  %v5840_v47 = vld [vmem:[#allocation11 + $0x210] ss:$28 sps:$4 sm:$0xff]   ;;  %v5837_v48 = vld [vmem:[#allocation11 + $0x48] ss:$28 sps:$4 sm:$0xff]  }
 0x44b   :  { %v6402_v54 = vpop.f32.mrb[8].mxu1 }
 0x44c   :  { %v2625_v55 = vpop.f32.mrb[9].mxu1  ;;  %v2624_v36 = vadd.f32 %v6402_v54, %v2379_v31  ;;  %v5849_v54 = vld [vmem:[#allocation11 + $0xbc] ss:$28 sps:$4 sm:$0xff]  }
 0x44d   :  { %v2626_v56 = vadd.f32 %v2625_v55, %v2383_v49  ;;  %v2627_v57 = vpop.f32.mrb[10].mxu1  ;;  %4137 = vmatpush1.bf16.msra.mxu1 %v5772_v50  ;;  %4219 = vmatpush1.bf16.msra.mxu0 %v5775_v51  ;;  %v5841_v49 = vld [vmem:[#allocation11 + $0x50] ss:$28 sps:$4 sm:$0xff]   ;;  %v5844_v50 = vld [vmem:[#allocation11 + $0x84] ss:$28 sps:$4 sm:$0xff]  }
 0x44e   :  { %v2628_v60 = vpop.f32.mrb[11].mxu1  ;;  %4138 = vmatprep.subr.bf16.mxu1 %v5780_v52  ;;  %4220 = vmatprep.subr.bf16.mxu0 %v5783_v53  ;;  %v2632_v41 = vmax.f32 %v2624_v36, 0.0  ;;  %v5845_v51 = vld [vmem:[#allocation11 + $0x248] ss:$28 sps:$4 sm:$0xff]   ;;  %v5842_v52 = vld [vmem:[#allocation11 + $0x80] ss:$28 sps:$4 sm:$0xff]  }
 0x44f   :  { %v2633_v63 = vmax.f32 %v2626_v56, 0.0  ;;  %v5846_v53 = vld [vmem:[#allocation11 + $0x88] ss:$28 sps:$4 sm:$0xff]   ;;  %v5850_v55 = vld [vmem:[#allocation11 + $0x280] ss:$28 sps:$4 sm:$0xff]  }
 0x450   :  { %v6411_v44 = vpack.c.bf16 %v2632_v41, %v2632_v41  ;;  %v5847_v56 = vld [vmem:[#allocation11 + $0xb8] ss:$28 sps:$4 sm:$0xff]   ;;  %v5851_v57 = vld [vmem:[#allocation11 + $0xc0] ss:$28 sps:$4 sm:$0xff]   ;;  %v5892_v36 = vld [vmem:[#allocation11 + $0x2b0] ss:$28 sps:$4 sm:$0xff]  }
 0x451   :  { %v6404_v0 = vpack.c.bf16 %v2633_v63, %v2633_v63  ;;  %4139 = vmatpush1.bf16.msra.mxu1 %v5778_v58  ;;  %4221 = vmatpush1.bf16.msra.mxu0 %v5781_v59  ;;  %v5854_v58 = vld [vmem:[#allocation11 + $0xf4] ss:$28 sps:$4 sm:$0xff]   ;;  %v5857_v63 = vld [vmem:[#allocation11 + $0x128] ss:$28 sps:$4 sm:$0xff]   ;;  %v5890_v31 = vld [vmem:[#allocation11 + $0x600] ss:$28 sps:$4 sm:$0xff]  }
 0x452   :  { %4140 = vmatprep.subr.bf16.mxu1 %v5786_v61  ;;  %4222 = vmatprep.subr.bf16.mxu0 %v5789_v62  ;;  %v5852_v59 = vld [vmem:[#allocation11 + $0xf0] ss:$28 sps:$4 sm:$0xff]   ;;  %v5856_v60 = vld [vmem:[#allocation11 + $0xf8] ss:$28 sps:$4 sm:$0xff]  }
 0x453   :  { %4156 = vmatprep.mubr.bf16.mxu1 %v6404_v0  ;;  %4238 = vmatprep.mubr.bf16.mxu0 %v6404_v0  ;;  %v5859_v61 = vld [vmem:[#allocation11 + $0x12c] ss:$28 sps:$4 sm:$0xff]  }
 0x454   :  { %v5860_v62 = vld [vmem:[#allocation11 + $0x2f0] ss:$28 sps:$4 sm:$0xff]  }
 0x455   :  { %4141 = vmatpush1.bf16.msra.mxu1 %v5784_v1  ;;  %4223 = vmatpush1.bf16.msra.mxu0 %v5787_v2  ;;  %v5861_v1 = vld [vmem:[#allocation11 + $0x130] ss:$28 sps:$4 sm:$0xff]   ;;  %v5864_v2 = vld [vmem:[#allocation11 + $0x164] ss:$28 sps:$4 sm:$0xff]  }
 0x456   :  { %4142 = vmatprep.subr.bf16.mxu1 %v5792_v3  ;;  %4224 = vmatprep.subr.bf16.mxu0 %v5795_v5  ;;  %v5865_v3 = vld [vmem:[#allocation11 + $0x328] ss:$28 sps:$4 sm:$0xff]   ;;  %v5862_v5 = vld [vmem:[#allocation11 + $0x160] ss:$28 sps:$4 sm:$0xff]   ;;  %v5901_v41 = vld [vmem:[#allocation11 + $0x4b0] ss:$28 sps:$4 sm:$0xff]  }
 0x459   :  { %4143 = vmatpush1.bf16.msra.mxu1 %v5790_v6  ;;  %4225 = vmatpush1.bf16.msra.mxu0 %v5793_v7  ;;  %v5866_v6 = vld [vmem:[#allocation11 + $0x168] ss:$28 sps:$4 sm:$0xff]   ;;  %v5869_v7 = vld [vmem:[#allocation11 + $0x19c] ss:$28 sps:$4 sm:$0xff]  }
 0x45a   :  { %4144 = vmatprep.subr.bf16.mxu1 %v5798_v9  ;;  %4226 = vmatprep.subr.bf16.mxu0 %v5801_v10  ;;  %v5870_v9 = vld [vmem:[#allocation11 + $0x360] ss:$28 sps:$4 sm:$0xff]   ;;  %v5867_v10 = vld [vmem:[#allocation11 + $0x198] ss:$28 sps:$4 sm:$0xff]  }
 0x45d   :  { %4145 = vmatpush1.bf16.msra.mxu1 %v5796_v12  ;;  %4227 = vmatpush1.bf16.msra.mxu0 %v5799_v13  ;;  %v5871_v12 = vld [vmem:[#allocation11 + $0x1a0] ss:$28 sps:$4 sm:$0xff]   ;;  %v5874_v13 = vld [vmem:[#allocation11 + $0x1d4] ss:$28 sps:$4 sm:$0xff]  }
 0x45e   :  { %4146 = vmatprep.subr.bf16.mxu1 %v5804_v14  ;;  %4228 = vmatprep.subr.bf16.mxu0 %v5807_v15  ;;  %v5875_v14 = vld [vmem:[#allocation11 + $0x558] ss:$28 sps:$4 sm:$0xff]   ;;  %v5872_v15 = vld [vmem:[#allocation11 + $0x1d0] ss:$28 sps:$4 sm:$0xff]  }
 0x461   :  { %4147 = vmatpush1.bf16.msra.mxu1 %v5802_v16  ;;  %4229 = vmatpush1.bf16.msra.mxu0 %v5805_v17  ;;  %v5876_v16 = vld [vmem:[#allocation11 + $0x398] ss:$28 sps:$4 sm:$0xff]   ;;  %v5879_v17 = vld [vmem:[#allocation11 + $0x20c] ss:$28 sps:$4 sm:$0xff]  }
 0x462   :  { %4148 = vmatprep.subr.bf16.mxu1 %v5810_v20  ;;  %4230 = vmatprep.subr.bf16.mxu0 %v5813_v23  ;;  %v5880_v20 = vld [vmem:[#allocation11 + $0x590] ss:$28 sps:$4 sm:$0xff]   ;;  %v5877_v23 = vld [vmem:[#allocation11 + $0x208] ss:$28 sps:$4 sm:$0xff]  }
 0x465   :  { %4149 = vmatpush1.bf16.msra.mxu1 %v5808_v25  ;;  %4231 = vmatpush1.bf16.msra.mxu0 %v5811_v26  ;;  %v5881_v25 = vld [vmem:[#allocation11 + $0x3d0] ss:$28 sps:$4 sm:$0xff]   ;;  %v5884_v26 = vld [vmem:[#allocation11 + $0x244] ss:$28 sps:$4 sm:$0xff]  }
 0x466   :  { %4150 = vmatprep.subr.bf16.mxu1 %v5816_v28  ;;  %4232 = vmatprep.subr.bf16.mxu0 %v5819_v29  ;;  %v5885_v28 = vld [vmem:[#allocation11 + $0x5c8] ss:$28 sps:$4 sm:$0xff]   ;;  %v5882_v29 = vld [vmem:[#allocation11 + $0x240] ss:$28 sps:$4 sm:$0xff]  }
 0x469   :  { %4151 = vmatpush1.bf16.msra.mxu1 %v5814_v30  ;;  %4233 = vmatpush1.bf16.msra.mxu0 %v5817_v22  ;;  %v5886_v30 = vld [vmem:[#allocation11 + $0x408] ss:$28 sps:$4 sm:$0xff]   ;;  %v5889_v22 = vld [vmem:[#allocation11 + $0x27c] ss:$28 sps:$4 sm:$0xff]  }
 0x46a   :  { %4152 = vmatprep.subr.bf16.mxu1 %v5822_v32  ;;  %4234 = vmatprep.subr.bf16.mxu0 %v5825_v33  ;;  %v5887_v32 = vld [vmem:[#allocation11 + $0x278] ss:$28 sps:$4 sm:$0xff]   ;;  %v5891_v33 = vld [vmem:[#allocation11 + $0x440] ss:$28 sps:$4 sm:$0xff]  }
 0x46d   :  { %4153 = vmatpush1.bf16.msra.mxu1 %v5820_v34  ;;  %4235 = vmatpush1.bf16.msra.mxu0 %v5823_v35  ;;  %v5894_v34 = vld [vmem:[#allocation11 + $0x2b4] ss:$28 sps:$4 sm:$0xff]  }
 0x46e   :  { %4154 = vmatprep.subr.bf16.mxu1 %v5828_v37  ;;  %4236 = vmatprep.subr.bf16.mxu0 %v5831_v38  ;;  %v5895_v35 = vld [vmem:[#allocation11 + $0x638] ss:$28 sps:$4 sm:$0xff]   ;;  %v5899_v38 = vld [vmem:[#allocation11 + $0x2ec] ss:$28 sps:$4 sm:$0xff]  }
 0x46f   :  { %v5896_v37 = vld [vmem:[#allocation11 + $0x478] ss:$28 sps:$4 sm:$0xff]  }
 0x471   :  { %4155 = vmatpush1.bf16.msra.mxu1 %v5826_v39  ;;  %4237 = vmatpush1.bf16.msra.mxu0 %v5829_v40  ;;  %v5900_v39 = vld [vmem:[#allocation11 + $0x670] ss:$28 sps:$4 sm:$0xff]   ;;  %v5897_v40 = vld [vmem:[#allocation11 + $0x2e8] ss:$28 sps:$4 sm:$0xff]  }
 0x472   :  { %4247 = vmatprep.subr.bf16.mxu1 %v5834_v8  ;;  %5042 = vmatprep.subr.bf16.mxu0 %v5835_v42  ;;  %v5904_v8 = vld [vmem:[#allocation11 + $0x324] ss:$28 sps:$4 sm:$0xff]  }
 0x473   :  { %v5905_v42 = vld [vmem:[#allocation11 + $0x6a8] ss:$28 sps:$4 sm:$0xff]  }
 0x474   :  { %4157 = vmatmul.mubr.bf16.vlgmr.msra.gmra.mrb[12].mxu1 %v6411_v44  ;;  %4239 = vmatmul.mubr.bf16.vlgmr.msra.gmra.mrb[8].mxu0 %v6411_v44 }
 0x475   :  { %4248 = vmatpush1.bf16.msra.mxu1 %v5832_v43  ;;  %4279 = vmatprep.mubr.bf16.mxu1 %v6392_v24  ;;  %v5902_v43 = vld [vmem:[#allocation11 + $0x320] ss:$28 sps:$4 sm:$0xff]  }
 0x476   :  { %5043 = vmatpush3.bf16.msra.mxu0 %v5836_v45  ;;  %4361 = vmatprep.mubr.bf16.mxu0 %v6392_v24  ;;  %v5855_v24 = vld [vmem:[#allocation11 + $0x2b8] ss:$28 sps:$4 sm:$0xff]   ;;  %v5906_v45 = vld [vmem:[#allocation11 + $0x4e8] ss:$28 sps:$4 sm:$0xff]  }
 0x477   :  { %4249 = vmatprep.subr.bf16.mxu1 %v5839_v46  ;;  %5044 = vmatprep.subr.bf16.mxu0 %v5840_v47  ;;  %v5909_v46 = vld [vmem:[#allocation11 + $0x35c] ss:$28 sps:$4 sm:$0xff]  }
 0x478   :  { %v5910_v47 = vld [vmem:[#allocation11 + $0x6e0] ss:$28 sps:$4 sm:$0xff]  }
 0x479   :  { %4250 = vmatpush1.bf16.msra.mxu1 %v5837_v48  ;;  %v5907_v48 = vld [vmem:[#allocation11 + $0x358] ss:$28 sps:$4 sm:$0xff]  }
 0x47a   :  { %5045 = vmatpush3.bf16.msra.mxu0 %v5841_v49  ;;  %4251 = vmatprep.subr.bf16.mxu1 %v5844_v50  ;;  %v5911_v49 = vld [vmem:[#allocation11 + $0x520] ss:$28 sps:$4 sm:$0xff]   ;;  %v5914_v50 = vld [vmem:[#allocation11 + $0x394] ss:$28 sps:$4 sm:$0xff]  }
 0x47b   :  { %5046 = vmatprep.subr.bf16.mxu0 %v5845_v51  ;;  %v5912_v51 = vld [vmem:[#allocation11 + $0x390] ss:$28 sps:$4 sm:$0xff]  }
 0x47d   :  { %4252 = vmatpush1.bf16.msra.mxu1 %v5842_v52  ;;  %v5917_v52 = vld [vmem:[#allocation11 + $0x3cc] ss:$28 sps:$4 sm:$0xff]  }
 0x47e   :  { %5047 = vmatpush3.bf16.msra.mxu0 %v5846_v53  ;;  %4253 = vmatprep.subr.bf16.mxu1 %v5849_v54  ;;  %v5915_v53 = vld [vmem:[#allocation11 + $0x3c8] ss:$28 sps:$4 sm:$0xff]  }
 0x47f   :  { %5048 = vmatprep.subr.bf16.mxu0 %v5850_v55  ;;  %v5920_v54 = vld [vmem:[#allocation11 + $0x404] ss:$28 sps:$4 sm:$0xff]  }
 0x480   :  { %v5918_v55 = vld [vmem:[#allocation11 + $0x400] ss:$28 sps:$4 sm:$0xff]  }
 0x481   :  { %4254 = vmatpush1.bf16.msra.mxu1 %v5847_v56  ;;  %v5923_v56 = vld [vmem:[#allocation11 + $0x43c] ss:$28 sps:$4 sm:$0xff]  }
 0x482   :  { %5049 = vmatpush3.bf16.msra.mxu0 %v5851_v57  ;;  %4255 = vmatprep.subr.bf16.mxu1 %v5854_v58  ;;  %v5921_v57 = vld [vmem:[#allocation11 + $0x438] ss:$28 sps:$4 sm:$0xff]  }
 0x483   :  { %5050 = vmatprep.subr.bf16.mxu0 %v5855_v24  ;;  %v5926_v58 = vld [vmem:[#allocation11 + $0x474] ss:$28 sps:$4 sm:$0xff]  }
 0x484   :  { %v5924_v24 = vld [vmem:[#allocation11 + $0x470] ss:$28 sps:$4 sm:$0xff]  }
 0x485   :  { %4256 = vmatpush1.bf16.msra.mxu1 %v5852_v59  ;;  %v5927_v59 = vld [vmem:[#allocation11 + $0x4a8] ss:$28 sps:$4 sm:$0xff]  }
 0x486   :  { %5051 = vmatpush3.bf16.msra.mxu0 %v5856_v60  ;;  %4257 = vmatprep.subr.bf16.mxu1 %v5859_v61  ;;  %v5932_v60 = vld [vmem:[#allocation11 + $0x4e4] ss:$28 sps:$4 sm:$0xff]   ;;  %v5935_v61 = vld [vmem:[#allocation11 + $0x51c] ss:$28 sps:$4 sm:$0xff]  }
 0x487   :  { %5052 = vmatprep.subr.bf16.mxu0 %v5860_v62  ;;  %v5933_v62 = vld [vmem:[#allocation11 + $0x518] ss:$28 sps:$4 sm:$0xff]  }
 0x489   :  { %4258 = vmatpush1.bf16.msra.mxu1 %v5857_v63  ;;  %v5938_v63 = vld [vmem:[#allocation11 + $0x554] ss:$28 sps:$4 sm:$0xff]  }
 0x48a   :  { %5053 = vmatpush3.bf16.msra.mxu0 %v5861_v1  ;;  %4259 = vmatprep.subr.bf16.mxu1 %v5864_v2  ;;  %v5936_v1 = vld [vmem:[#allocation11 + $0x550] ss:$28 sps:$4 sm:$0xff]  }
 0x48b   :  { %5054 = vmatprep.subr.bf16.mxu0 %v5865_v3  ;;  %v5941_v2 = vld [vmem:[#allocation11 + $0x58c] ss:$28 sps:$4 sm:$0xff]  }
 0x48c   :  { %v5939_v3 = vld [vmem:[#allocation11 + $0x588] ss:$28 sps:$4 sm:$0xff]  }
 0x48d   :  { %4260 = vmatpush1.bf16.msra.mxu1 %v5862_v5  ;;  %v5944_v5 = vld [vmem:[#allocation11 + $0x5c4] ss:$28 sps:$4 sm:$0xff]  }
 0x48e   :  { %5055 = vmatpush3.bf16.msra.mxu0 %v5866_v6  ;;  %4261 = vmatprep.subr.bf16.mxu1 %v5869_v7  ;;  %v5942_v6 = vld [vmem:[#allocation11 + $0x5c0] ss:$28 sps:$4 sm:$0xff]  }
 0x48f   :  { %5056 = vmatprep.subr.bf16.mxu0 %v5870_v9  ;;  %v5947_v7 = vld [vmem:[#allocation11 + $0x5fc] ss:$28 sps:$4 sm:$0xff]  }
 0x490   :  { %v5945_v9 = vld [vmem:[#allocation11 + $0x5f8] ss:$28 sps:$4 sm:$0xff]  }
 0x491   :  { %4262 = vmatpush1.bf16.msra.mxu1 %v5867_v10  ;;  %v5950_v10 = vld [vmem:[#allocation11 + $0x634] ss:$28 sps:$4 sm:$0xff]  }
 0x492   :  { %5057 = vmatpush3.bf16.msra.mxu0 %v5871_v12  ;;  %4263 = vmatprep.subr.bf16.mxu1 %v5874_v13  ;;  %v5948_v12 = vld [vmem:[#allocation11 + $0x630] ss:$28 sps:$4 sm:$0xff]  }
 0x493   :  { %5064 = vmatprep.subr.bf16.mxu0 %v5875_v14  ;;  %v5953_v13 = vld [vmem:[#allocation11 + $0x66c] ss:$28 sps:$4 sm:$0xff]  }
 0x494   :  { %v5951_v14 = vld [vmem:[#allocation11 + $0x668] ss:$28 sps:$4 sm:$0xff]  }
 0x495   :  { %4362 = vmatmul.mubr.bf16.vlgmr.msra.gmra.mrb[12].mxu0 %v6394_v27  ;;  %4264 = vmatpush1.bf16.msra.mxu1 %v5872_v15  ;;  %v5956_v15 = vld [vmem:[#allocation11 + $0x6a4] ss:$28 sps:$4 sm:$0xff]  }
 0x496   :  { %5065 = vmatpush3.bf16.msra.mxu0 %v5876_v16  ;;  %4401 = vmatprep.mubr.bf16.mxu0 %v6404_v0  ;;  %v5954_v16 = vld [vmem:[#allocation11 + $0x6a0] ss:$28 sps:$4 sm:$0xff]  }
 0x497   :  { %4265 = vmatprep.subr.bf16.mxu1 %v5879_v17  ;;  %5066 = vmatprep.subr.bf16.mxu0 %v5880_v20  ;;  %v5959_v17 = vld [vmem:[#allocation11 + $0x6dc] ss:$28 sps:$4 sm:$0xff]  }
 0x498   :  { %v5957_v20 = vld [vmem:[#allocation11 + $0x6d8] ss:$28 sps:$4 sm:$0xff]  }
 0x499   :  { %4266 = vmatpush1.bf16.msra.mxu1 %v5877_v23  ;;  %v6426_v23 = vld [vmem:[%s6475_s9] sm:$0xff]  ;;  %s6177_s9 = smov [#allocation14]  }
 0x49a   :  { %5067 = vmatpush3.bf16.msra.mxu0 %v5881_v25  ;;  %4267 = vmatprep.subr.bf16.mxu1 %v5884_v26  ;;  %v2899_v25 = vrot.slane %v6426_v23, %v6350_v19  ;;  %v2907_v26 = vrot.slane %v6426_v23, %v6372_v4  ;;  %s4467_s4 = sshll.u32 %s6177_s9, 4  ;;  %s4468_s4 = int_to_ptr.vmem [resolvable:$true] %s4467_s4 }
 0x49b   :  { %5068 = vmatprep.subr.bf16.mxu0 %v5885_v28  ;;  %v2903_v28 = vrot.slane %v6426_v23, %v6358_v21  ;;  %s6108_s20 = scalar_lea.vmem %s4468_s4, 256  ;;  %p6113_p7 = scmp.lt.s32.totalorder %s4468_s4, %s4468_s4 }
 0x49c   :  { %p6109_p6 = scmp.ne.s32.totalorder %s4468_s4, %s6108_s20  ;;  %p6114_p8 = scmp.lt.s32.totalorder %s6108_s20, %s6108_s20 }
 0x49d   :  { %4268 = vmatpush1.bf16.msra.mxu1 %v5882_v29  ;;  %v2911_v29 = vrot.slane %v6426_v23, %v6361_v11 }
 0x49e   :  { %5069 = vmatpush3.bf16.msra.mxu0 %v5886_v30  ;;  %4269 = vmatprep.subr.bf16.mxu1 %v5889_v22  ;;  %p6115_p9 = por %p6114_p8, %p6113_p7 }
 0x49f   :  { %5070 = vmatprep.subr.bf16.mxu0 %v5890_v31 }
 0x4a0   :  { %p6116_p10 = pnand %p6115_p9, %p6109_p6 }
 0x4a1   :  { %4270 = vmatpush1.bf16.msra.mxu1 %v5887_v32 }
 0x4a2   :  { %5071 = vmatpush3.bf16.msra.mxu0 %v5891_v33  ;;  %4271 = vmatprep.subr.bf16.mxu1 %v5894_v34 }
 0x4a3   :  { %5072 = vmatprep.subr.bf16.mxu0 %v5895_v35 }
 0x4a5   :  { %4272 = vmatpush1.bf16.msra.mxu1 %v5892_v36 }
 0x4a6   :  { %5073 = vmatpush3.bf16.msra.mxu0 %v5896_v37  ;;  %4273 = vmatprep.subr.bf16.mxu1 %v5899_v38 }
 0x4a7   :  { %5074 = vmatprep.subr.bf16.mxu0 %v5900_v39 }
 0x4a9   :  { %4274 = vmatpush1.bf16.msra.mxu1 %v5897_v40 }
 0x4aa   :  { %5075 = vmatpush3.bf16.msra.mxu0 %v5901_v41  ;;  %4275 = vmatprep.subr.bf16.mxu1 %v5904_v8 }
 0x4ab   :  { %5076 = vmatprep.subr.bf16.mxu0 %v5905_v42 }
 0x4ad   :  { %4276 = vmatpush1.bf16.msra.mxu1 %v5902_v43 }
 0x4ae   :  { %5077 = vmatpush3.bf16.msra.mxu0 %v5906_v45  ;;  %4277 = vmatprep.subr.bf16.mxu1 %v5909_v46 }
 0x4af   :  { %5078 = vmatprep.subr.bf16.mxu0 %v5910_v47 }
 0x4b1   :  { %4278 = vmatpush1.bf16.msra.mxu1 %v5907_v48 }
 0x4b2   :  { %5079 = vmatpush3.bf16.msra.mxu0 %v5911_v49  ;;  %4288 = vmatprep.subr.bf16.mxu1 %v5914_v50 }
 0x4b4   :  { %4280 = vmatmul.mubr.bf16.vlgmr.msra.gmra.mrb[16].mxu1 %v6394_v27  ;;  %v5929_v27 = vld [vmem:[#allocation11 + $0x4ac] ss:$28 sps:$4 sm:$0xff]  }
 0x4b5   :  { %4402 = vmatmul.mubr.bf16.vlgmr.msra.gmra.mrb[16].mxu0 %v6411_v44  ;;  %4289 = vmatpush1.bf16.msra.mxu1 %v5912_v51 }
 0x4b6   :  { %4320 = vmatprep.mubr.bf16.mxu1 %v6404_v0  ;;  %4290 = vmatprep.subr.bf16.mxu1 %v5917_v52  ;;  %v5930_v0 = vld [vmem:[#allocation11 + $0x4e0] ss:$28 sps:$4 sm:$0xff]  }
 0x4b9   :  { %4291 = vmatpush1.bf16.msra.mxu1 %v5915_v53 }
 0x4ba   :  { %4292 = vmatprep.subr.bf16.mxu1 %v5920_v54 }
 0x4bd   :  { %4293 = vmatpush1.bf16.msra.mxu1 %v5918_v55 }
 0x4be   :  { %4294 = vmatprep.subr.bf16.mxu1 %v5923_v56 }
 0x4c1   :  { %4295 = vmatpush1.bf16.msra.mxu1 %v5921_v57 }
 0x4c2   :  { %4296 = vmatprep.subr.bf16.mxu1 %v5926_v58 }
 0x4c5   :  { %4297 = vmatpush1.bf16.msra.mxu1 %v5924_v24 }
 0x4c6   :  { %4298 = vmatprep.subr.bf16.mxu1 %v5929_v27 }
 0x4c9   :  { %4299 = vmatpush1.bf16.msra.mxu1 %v5927_v59 }
 0x4ca   :  { %4300 = vmatprep.subr.bf16.mxu1 %v5932_v60 }
 0x4cd   :  { %4301 = vmatpush1.bf16.msra.mxu1 %v5930_v0 }
 0x4ce   :  { %4302 = vmatprep.subr.bf16.mxu1 %v5935_v61 }
 0x4d1   :  { %4303 = vmatpush1.bf16.msra.mxu1 %v5933_v62 }
 0x4d2   :  { %4304 = vmatprep.subr.bf16.mxu1 %v5938_v63 }
 0x4d5   :  { %4305 = vmatpush1.bf16.msra.mxu1 %v5936_v1 }
 0x4d6   :  { %4306 = vmatprep.subr.bf16.mxu1 %v5941_v2 }
 0x4d9   :  { %4307 = vmatpush1.bf16.msra.mxu1 %v5939_v3 }
 0x4da   :  { %4308 = vmatprep.subr.bf16.mxu1 %v5944_v5 }
 0x4dd   :  { %4309 = vmatpush1.bf16.msra.mxu1 %v5942_v6 }
 0x4de   :  { %4310 = vmatprep.subr.bf16.mxu1 %v5947_v7 }
 0x4e1   :  { %4311 = vmatpush1.bf16.msra.mxu1 %v5945_v9 }
 0x4e2   :  { %4312 = vmatprep.subr.bf16.mxu1 %v5950_v10 }
 0x4e5   :  { %4313 = vmatpush1.bf16.msra.mxu1 %v5948_v12 }
 0x4e6   :  { %4314 = vmatprep.subr.bf16.mxu1 %v5953_v13 }
 0x4e9   :  { %4315 = vmatpush1.bf16.msra.mxu1 %v5951_v14 }
 0x4ea   :  { %4316 = vmatprep.subr.bf16.mxu1 %v5956_v15 }
 0x4ed   :  { %4317 = vmatpush1.bf16.msra.mxu1 %v5954_v16 }
 0x4ee   :  { %4318 = vmatprep.subr.bf16.mxu1 %v5959_v17 }
 0x4f1   :  { %4319 = vmatpush1.bf16.msra.mxu1 %v5957_v20 }
 0x4f4   :  { %4321 = vmatmul.mubr.bf16.vlgmr.msra.gmra.mrb[16].mxu1 %v6411_v44 }
 0x547   :  { %v4158_v30 = vpop.f32.mrb[12].mxu1  ;;  %v4240_v22 = vpop.f32.mrb[8].mxu0 }
 0x548   :  { %v5092_v44 = vadd.f32 %v4158_v30, %v2899_v25  ;;  %v5094_v31 = vadd.f32 %v4240_v22, %v2907_v26  ;;  %v4160_v32 = vpop.f32.mrb[13].mxu1  ;;  %v4242_v33 = vpop.f32.mrb[9].mxu0 }
 0x549   :  { %v5093_v34 = vadd.f32 %v4160_v32, %v2903_v28  ;;  %v5095_v35 = vadd.f32 %v4242_v33, %v2911_v29  ;;  %v4162_v36 = vpop.f32.mrb[14].mxu1  ;;  %v4244_v37 = vpop.f32.mrb[10].mxu0 }
 0x54a   :  { %5962 = vtanh.f32 %v5092_v44  ;;  %v4163_v19 = vpop.f32.mrb[15].mxu1  ;;  %v4245_v38 = vpop.f32.mrb[11].mxu0 }
 0x54b   :  { %5964 = vtanh.f32 %v5094_v31 }
 0x54c   :  { %5966 = vtanh.f32 %v5093_v34 }
 0x54d   :  { %5968 = vtanh.f32 %v5095_v35 }
 0x554   :  { %v5963_v21 = vpop.eup %5962 }
 0x555   :  { %v5965_v4 = vpop.eup %5964 }
 0x556   :  { %v5967_v39 = vpop.eup %5966 }
 0x557   :  { %v5969_v11 = vpop.eup %5968  ;;  %v5038_v40 = vpack.c.bf16 %v5967_v39, %v5963_v21 }
 0x558   :  { %v5039_v41 = vpack.c.bf16 %v5969_v11, %v5965_v4 }
 0x559   :  { %4445 = vst [vmem:[#allocation13] sm:$0xff] %v5038_v40 }
 0x55a   :  { %4446 = vst [vmem:[#allocation13 + $0x8] sm:$0xff] %v5039_v41 }
 0x55b   :  { %6119 = shalt.err (!%p6116_p10)
}
 0x55c   :  { %s6120_s19 = scalar_lea.hbm %s6477_s11, 256 }
 0x55d   :  { %p6121_p11 = scmp.ne.s32.totalorder %s6477_s11, %s6120_s19  ;;  %p6124_p12 = scmp.lt.u32.totalorder %s6120_s19, %s6477_s11 }
 0x55f   :  { %p6126_p13 = pnand %p6124_p12, %p6121_p11 }
 0x561   :  { %6129 = shalt.err (!%p6126_p13)
}
 0x562   :  { %4470 = dma.vmem_to_hbm [thread:$0]  %s4468_s4, 256, %s6477_s11, [#allocation15]   ;;  %v2922_v47 = vsub.s32 6, %v6347_v18  ;;  %v2914_v58 = vsub.s32 4, %v6347_v18  ;;  %v2918_v24 = vsub.s32 5, %v6347_v18 }
 0x563   :  { %s6178_s11 = smov [#allocation13]  }
 0x564   :  { %v2923_v48 = vrot.slane %v6426_v23, %v2922_v47  ;;  %v2915_v27 = vrot.slane %v6426_v23, %v2914_v58  ;;  %v2919_v59 = vrot.slane %v6426_v23, %v2918_v24  ;;  %s4457_s23 = sshll.u32 %s6178_s11, 4  ;;  %s4458_s23 = int_to_ptr.vmem [resolvable:$true] %s4457_s23 }
 0x565   :  { %s6130_s24 = scalar_lea.vmem %s4458_s23, 448  ;;  %p6135_p1 = scmp.lt.s32.totalorder %s4458_s23, %s4458_s23 }
 0x566   :  { %p6131_p0 = scmp.ne.s32.totalorder %s4458_s23, %s6130_s24  ;;  %p6136_p2 = scmp.lt.s32.totalorder %s6130_s24, %s6130_s24 }
 0x568   :  { %v5058_v8 = vpop.f32.mrb[12].mxu0  ;;  %p6137_p3 = por %p6136_p2, %p6135_p1 }
 0x569   :  { %v5059_v42 = vpop.f32.mrb[13].mxu0 }
 0x56a   :  { %v5060_v43 = vadd.f32 %v5059_v42, %v5058_v8  ;;  %v5061_v45 = vpop.f32.mrb[14].mxu0  ;;  %p6138_p4 = pnand %p6137_p3, %p6131_p0 }
 0x56b   :  { %v5062_v46 = vpop.f32.mrb[15].mxu0 }
 0x56c   :  { %v4364_v51 = vadd.f32 %v5060_v43, %v2923_v48 }
 0x588   :  { %v5080_v49 = vpop.f32.mrb[16].mxu0 }
 0x589   :  { %v5081_v50 = vpop.f32.mrb[17].mxu0 }
 0x58a   :  { %v5082_v52 = vadd.f32 %v5081_v50, %v5080_v49  ;;  %v5083_v53 = vpop.f32.mrb[18].mxu0 }
 0x58b   :  { %v5084_v54 = vpop.f32.mrb[19].mxu0 }
 0x58c   :  { %v4404_v55 = vadd.f32 %v5082_v52, %v4364_v51 }
 0x58e   :  { %5970 = vtanh.f32 %v4404_v55 }
 0x598   :  { %v5971_v56 = vpop.eup %5970 }
 0x599   :  { %v5041_v57 = vpack.c.bf16 %v5971_v56, %v5971_v56 }
 0x59b   :  { %4448 = vst [vmem:[#allocation13 + $0x18] sm:$0xf] %v5041_v57 }
 0x5c7   :  { %v4322_v60 = vpop.f32.mrb[16].mxu1 }
 0x5c8   :  { %v5096_v0 = vadd.f32 %v4322_v60, %v2915_v27  ;;  %v4324_v61 = vpop.f32.mrb[17].mxu1 }
 0x5c9   :  { %v5097_v62 = vadd.f32 %v4324_v61, %v2919_v59  ;;  %v4326_v63 = vpop.f32.mrb[18].mxu1 }
 0x5ca   :  { %5972 = vtanh.f32 %v5096_v0  ;;  %v4327_v1 = vpop.f32.mrb[19].mxu1 }
 0x5cb   :  { %5974 = vtanh.f32 %v5097_v62 }
 0x5d4   :  { %v5973_v2 = vpop.eup %5972 }
 0x5d5   :  { %v5975_v3 = vpop.eup %5974 }
 0x5d6   :  { %v5040_v5 = vpack.c.bf16 %v5975_v3, %v5973_v2 }
 0x5d8   :  { %4447 = vst [vmem:[#allocation13 + $0x10] sm:$0xff] %v5040_v5 }
 0x5d9   :  { %6141 = shalt.err (!%p6138_p4)
}
 0x5da   :  { %s6142_s29 = scalar_lea.hbm %s6476_s10, 448 }
 0x5db   :  { %p6143_p5 = scmp.ne.s32.totalorder %s6476_s10, %s6142_s29  ;;  %p6146_p6 = scmp.lt.u32.totalorder %s6142_s29, %s6476_s10 }
 0x5dd   :  { %p6148_p7 = pnand %p6146_p6, %p6143_p5 }
 0x5df   :  { %6151 = shalt.err (!%p6148_p7)
}
 0x5e0   :  { %4460 = dma.vmem_to_hbm [thread:$0]  %s4458_s23, 448, %s6476_s10, [#allocation4]  }
 0x5e1   :  { %6160 = dma.done.wait [#allocation4], 448  }
 0x5e2   :  { %6161 = vsyncadd [#allocation4], 4294966848 }
 0x5e3   :  { %6162 = dma.done.wait [#allocation15], 256  }
 0x5e4   :  { %6163 = vsyncadd [#allocation15], 4294967040 }
 0x5e5   :  { %4477 = vsyncpa [#allocation3], 1 }
 0x5e6   :  { %4478 = vsyncpa [#allocation6], 1 }
 0x5e7   :  { %4479 = vsyncpa [#allocation9], 1 }
 0x5e8   :  { %4480 = vsyncpa [#allocation12], 1 }
 0x5e9   :  { %4481 = vsyncpa [#allocation4], 1 }
 0x5ea   :  { %4482 = vsyncpa [#allocation15], 1 }

</bundles_post_ra>
